<compile_context>
chip_gen: v7x
topology: tpu7x:2x2x1
jax: 0.10.0
libtpu: 0.0.40
codegen_flags: <defaults>
</compile_context>

<pallas_src>
import jax
import jax.numpy as jnp
from jax.experimental import pallas as pl
from jax.experimental.pallas import tpu as pltpu


# --------------------------------------------------------------------------
# Fused kernel: whole RES forward + L2-normalize
# grid = (batch_tiles, num_blocks); weights for one residual block streamed
# per inner grid step, activations carried in VMEM scratch.
# --------------------------------------------------------------------------
def _res_kernel(x_ref, wi_ref, bi_ref, wblk_ref, bblk_ref, wf_ref, bf_ref,
                o_ref, h_ref):
    blk = pl.program_id(1)

    # ---- initial: Linear (+ folded BN) + ReLU, only on the first block step
    @pl.when(blk == 0)
    def _():
        h0 = jnp.dot(x_ref[...].astype(jnp.bfloat16), wi_ref[...],
                     preferred_element_type=jnp.float32) + bi_ref[...]
        h_ref[...] = jnp.maximum(h0, 0.0)

    # ---- one residual block per grid step (weights streamed through VMEM) --
    h = h_ref[...]                                    # (tb, hidden) f32
    bb = bblk_ref[0]                                  # (2, hidden) f32
    t = jnp.dot(h.astype(jnp.bfloat16), wblk_ref[0, 0],
                preferred_element_type=jnp.float32) + bb[0:1]
    t = jnp.maximum(t, 0.0)
    # Dropout(p=0.2): identity in eval mode.
    # TODO(synk): training-mode dropout (stochastic mask) not implemented.
    t = jnp.dot(t.astype(jnp.bfloat16), wblk_ref[0, 1],
                preferred_element_type=jnp.float32) + bb[1:2]
    h = jnp.maximum(h + t, 0.0)
    h_ref[...] = h

    # ---- final: Linear + L2 normalize, only on the last block step ---------
    @pl.when(blk == pl.num_programs(1) - 1)
    def _():
        y = jnp.dot(h.astype(jnp.bfloat16), wf_ref[...],
                    preferred_element_type=jnp.float32) + bf_ref[...]
        ss = jnp.sum(y * y, axis=1, keepdims=True)
        # x / max(||x||, 1e-12)  ==  x * rsqrt(max(||x||^2, 1e-24))
        inv = jax.lax.rsqrt(jnp.maximum(ss, 1e-24))
        o_ref[...] = y * inv


def res_forward(x, params, *, max_batch_tile=256):
    (w_init, b_init, w_blocks, b_blocks, w_final, b_final) = params

    B, in_dim = x.shape
    hidden = w_init.shape[1]
    out_dim = w_final.shape[1]
    num_blocks = w_blocks.shape[0]

    # Pad batch to a multiple of 8 and pick the largest MXU-friendly row tile.
    B_pad = max(8, ((B + 7) // 8) * 8)
    if B_pad != B:
        x = jnp.pad(x, ((0, B_pad - B), (0, 0)))
    tb = next(t for t in (max_batch_tile, 128, 64, 32, 16, 8) if B_pad % t == 0)
    n_btiles = B_pad // tb

    flops = 2 * B_pad * (in_dim * hidden
                         + 2 * num_blocks * hidden * hidden
                         + hidden * out_dim)
    bytes_accessed = (
        B_pad * in_dim * 4
        + (w_init.size + w_blocks.size + w_final.size) * 2        # bf16 weights
        + (b_init.size + b_blocks.size + b_final.size) * 4
        + B_pad * out_dim * 4)

    out = pl.pallas_call(
        _res_kernel,
        out_shape=jax.ShapeDtypeStruct((B_pad, out_dim), jnp.float32),
        grid_spec=pltpu.PrefetchScalarGridSpec(
            num_scalar_prefetch=0,
            grid=(n_btiles, num_blocks),
            in_specs=[
                # x tile: resident across the block axis
                pl.BlockSpec((tb, in_dim), lambda b, k: (b, 0)),
                # initial Linear weights/bias: resident across whole grid
                pl.BlockSpec((in_dim, hidden), lambda b, k: (0, 0)),
                pl.BlockSpec((1, hidden), lambda b, k: (0, 0)),
                # per-block weights/biases: streamed (double-buffered by Pallas)
                pl.BlockSpec((1, 2, hidden, hidden), lambda b, k: (k, 0, 0, 0)),
                pl.BlockSpec((1, 2, hidden), lambda b, k: (k, 0, 0)),
                # final Linear weights/bias: resident
                pl.BlockSpec((hidden, out_dim), lambda b, k: (0, 0)),
                pl.BlockSpec((1, out_dim), lambda b, k: (0, 0)),
            ],
            out_specs=pl.BlockSpec((tb, out_dim), lambda b, k: (b, 0)),
            scratch_shapes=[pltpu.VMEM((tb, hidden), jnp.float32)],
        ),
        compiler_params=pltpu.CompilerParams(
            dimension_semantics=("parallel", "arbitrary"),
            vmem_limit_bytes=32 * 1024 * 1024),
        cost_estimate=pl.CostEstimate(flops=flops,
                                      transcendentals=B_pad,
                                      bytes_accessed=bytes_accessed),
    )(x, w_init, b_init, w_blocks, b_blocks, w_final, b_final)
    return out[:B]


# --------------------------------------------------------------------------
# Deterministic parameter construction. BN (eval / running stats) folded:
# the scale goes into the weight columns, the shift into the bias.
# --------------------------------------------------------------------------
def _linear_bn_fold(key, in_dim, out_dim):
    """Linear(in,out) + BatchNorm1d(out) folded into (W_fold, bias)."""
    kw, kb, kg, kbt, km, kv = jax.random.split(key, 6)
    limit = 1.0 / jnp.sqrt(jnp.float32(in_dim))
    W = jax.random.uniform(kw, (in_dim, out_dim), jnp.float32, -limit, limit)
    b = jax.random.uniform(kb, (out_dim,), jnp.float32, -limit, limit)
    eps = 1e-5
    gamma = 1.0 + 0.1 * jax.random.normal(kg, (out_dim,), jnp.float32)
    beta = 0.1 * jax.random.normal(kbt, (out_dim,), jnp.float32)
    mean = 0.1 * jax.random.normal(km, (out_dim,), jnp.float32)
    var = 1.0 + 0.1 * jax.random.uniform(kv, (out_dim,), jnp.float32)
    scale = gamma / jnp.sqrt(var + eps)
    W_fold = W * scale[None, :]                 # fold BN scale into columns
    bias = (b - mean) * scale + beta            # BN(xW + b) = x W_fold + bias
    return W_fold, bias


def init_res_params(key, input_dim=512, hidden=512, output_dim=512,
                    num_blocks=5):
    keys = jax.random.split(key, 2 * num_blocks + 2)

    W0, b0 = _linear_bn_fold(keys[0], input_dim, hidden)

    Ws, Bs = [], []
    for i in range(num_blocks):
        W1, bb1 = _linear_bn_fold(keys[1 + 2 * i], hidden, hidden)
        W2, bb2 = _linear_bn_fold(keys[2 + 2 * i], hidden, hidden)
        Ws.append(jnp.stack([W1, W2]))          # (2, hidden, hidden)
        Bs.append(jnp.stack([bb1, bb2]))        # (2, hidden)

    kw, kb = jax.random.split(keys[-1])
    limit = 1.0 / jnp.sqrt(jnp.float32(hidden))
    Wf = jax.random.uniform(kw, (hidden, output_dim), jnp.float32, -limit, limit)
    bf = jax.random.uniform(kb, (output_dim,), jnp.float32, -limit, limit)

    return (
        W0.astype(jnp.bfloat16),                # (in_dim, hidden)
        b0.reshape(1, hidden),                  # (1, hidden)
        jnp.stack(Ws).astype(jnp.bfloat16),     # (num_blocks, 2, hidden, hidden)
        jnp.stack(Bs),                          # (num_blocks, 2, hidden)
        Wf.astype(jnp.bfloat16),                # (hidden, out_dim)
        bf.reshape(1, output_dim),              # (1, out_dim)
    )


# --------------------------------------------------------------------------
# Pure-JAX reference (identical bf16-weight / f32-accumulation policy)
# --------------------------------------------------------------------------
def res_forward_ref(x, params):
    (w_init, b_init, w_blocks, b_blocks, w_final, b_final) = params
    num_blocks = w_blocks.shape[0]

    def lin(h, w, b):
        return jnp.dot(h.astype(jnp.bfloat16), w,
                       preferred_element_type=jnp.float32) + b

    h = jnp.maximum(lin(x, w_init, b_init), 0.0)
    for i in range(num_blocks):
        t = jnp.maximum(lin(h, w_blocks[i, 0], b_blocks[i, 0]), 0.0)
        t = lin(t, w_blocks[i, 1], b_blocks[i, 1])
        h = jnp.maximum(h + t, 0.0)
    y = lin(h, w_final, b_final)
    norm = jnp.sqrt(jnp.sum(y * y, axis=1, keepdims=True))
    return y / jnp.maximum(norm, 1e-12)


# --------------------------------------------------------------------------
if __name__ == "__main__":
    key = jax.random.PRNGKey(0)
    k_param, k_x = jax.random.split(key)

    B, INPUT_DIM, OUTPUT_DIM, NUM_BLOCKS = 8, 512, 512, 5
    params = init_res_params(k_param, INPUT_DIM, 512, OUTPUT_DIM, NUM_BLOCKS)
    x = jax.random.normal(k_x, (B, INPUT_DIM), jnp.float32)

    out = jax.block_until_ready(res_forward(x, params))

    assert out.shape == (B, OUTPUT_DIM)
    assert bool(jnp.all(jnp.isfinite(out)))
    # rows unit-norm after F.normalize
    norms = jnp.linalg.norm(out, axis=1)
    assert bool(jnp.all(jnp.abs(norms - 1.0) < 1e-4))
    # numerical match against pure-JAX reference with identical dtype policy
    ref = jax.block_until_ready(res_forward_ref(x, params))
    assert bool(jnp.allclose(out, ref, atol=5e-3, rtol=5e-2))
    print("KERNEL_OK")
</pallas_src>

<mosaic_0001>
module attributes {stable_mosaic.version = 11 : i64} {
  func.func @_res_kernel(%arg0: i32, %arg1: i32, %arg2: memref<8x512xf32, #tpu.memory_space<vmem>>, %arg3: memref<512x512xbf16, #tpu.memory_space<vmem>>, %arg4: memref<1x512xf32, #tpu.memory_space<vmem>>, %arg5: memref<1x2x512x512xbf16, #tpu.memory_space<vmem>>, %arg6: memref<1x2x512xf32, #tpu.memory_space<vmem>>, %arg7: memref<512x512xbf16, #tpu.memory_space<vmem>>, %arg8: memref<1x512xf32, #tpu.memory_space<vmem>>, %arg9: memref<8x512xf32, #tpu.memory_space<vmem>>, %arg10: memref<8x512xf32, #tpu.memory_space<vmem>>) attributes {dimension_semantics = [#tpu.dimension_semantics<parallel>, #tpu.dimension_semantics<arbitrary>], iteration_bounds = array<i64: 1, 5>, scalar_prefetch = 0 : i64, scratch_operands = 1 : i64, tpu.core_type = #tpu.core_type<tc>, window_params = [{transform_indices = @transform_0, window_bounds = array<i64: 8, 512>}, {pipeline_mode = #tpu.pipeline_mode<synchronous>, transform_indices = @transform_1, window_bounds = array<i64: 512, 512>}, {pipeline_mode = #tpu.pipeline_mode<synchronous>, transform_indices = @transform_2, window_bounds = array<i64: 1, 512>}, {transform_indices = @transform_3, window_bounds = array<i64: 1, 2, 512, 512>}, {transform_indices = @transform_4, window_bounds = array<i64: 1, 2, 512>}, {pipeline_mode = #tpu.pipeline_mode<synchronous>, transform_indices = @transform_5, window_bounds = array<i64: 512, 512>}, {pipeline_mode = #tpu.pipeline_mode<synchronous>, transform_indices = @transform_6, window_bounds = array<i64: 1, 512>}, {transform_indices = @transform_7, window_bounds = array<i64: 8, 512>}]} {
    %c0_i32 = arith.constant 0 : i32
    %0 = arith.cmpi eq, %arg1, %c0_i32 : i32
    %1 = arith.extui %0 : i1 to i32
    %c0_i32_0 = arith.constant 0 : i32
    %2 = arith.cmpi ne, %1, %c0_i32_0 : i32
    scf.if %2 {
      %c0_18 = arith.constant 0 : index
      %c0_19 = arith.constant 0 : index
      %29 = vector.load %arg2[%c0_18, %c0_19] : memref<8x512xf32, #tpu.memory_space<vmem>>, vector<8x512xf32>
      %30 = arith.truncf %29 : vector<8x512xf32> to vector<8x512xbf16>
      %c0_20 = arith.constant 0 : index
      %c0_21 = arith.constant 0 : index
      %31 = vector.load %arg3[%c0_20, %c0_21] : memref<512x512xbf16, #tpu.memory_space<vmem>>, vector<512x512xbf16>
      %cst_22 = arith.constant dense<0.000000e+00> : vector<8x512xf32>
      %32 = tpu.matmul %30, %31, %cst_22 {dimension_numbers = #tpu.dot_dimension_numbers<[1], [0], [0], [1], [0, 0, 1, 1], [], []>} : vector<8x512xbf16>, vector<512x512xbf16>, vector<8x512xf32> -> vector<8x512xf32>
      %c0_23 = arith.constant 0 : index
      %c0_24 = arith.constant 0 : index
      %33 = vector.load %arg4[%c0_23, %c0_24] : memref<1x512xf32, #tpu.memory_space<vmem>>, vector<1x512xf32>
      %34 = vector.broadcast %33 : vector<1x512xf32> to vector<8x512xf32>
      %35 = arith.addf %32, %34 : vector<8x512xf32>
      %cst_25 = arith.constant 0.000000e+00 : f32
      %36 = vector.broadcast %cst_25 : f32 to vector<8x512xf32>
      %37 = arith.maximumf %35, %36 : vector<8x512xf32>
      %c0_26 = arith.constant 0 : index
      %c0_27 = arith.constant 0 : index
      %38 = vector.load %arg10[%c0_26, %c0_27] : memref<8x512xf32, #tpu.memory_space<vmem>>, vector<8x512xf32>
      tpu.vector_store %arg10[%c0_26, %c0_27], %37 {strides = array<i32>} : memref<8x512xf32, #tpu.memory_space<vmem>>, vector<8x512xf32>,
    } else {
    }
    %c0 = arith.constant 0 : index
    %c0_1 = arith.constant 0 : index
    %3 = vector.load %arg10[%c0, %c0_1] : memref<8x512xf32, #tpu.memory_space<vmem>>, vector<8x512xf32>
    %c0_2 = arith.constant 0 : index
    %c0_3 = arith.constant 0 : index
    %c0_4 = arith.constant 0 : index
    %4 = vector.load %arg6[%c0_2, %c0_3, %c0_4] : memref<1x2x512xf32, #tpu.memory_space<vmem>>, vector<1x2x512xf32>
    %5 = vector.shape_cast %4 : vector<1x2x512xf32> to vector<2x512xf32>
    %6 = arith.truncf %3 : vector<8x512xf32> to vector<8x512xbf16>
    %c0_5 = arith.constant 0 : index
    %c0_6 = arith.constant 0 : index
    %c0_7 = arith.constant 0 : index
    %c0_8 = arith.constant 0 : index
    %7 = vector.load %arg5[%c0_5, %c0_6, %c0_7, %c0_8] : memref<1x2x512x512xbf16, #tpu.memory_space<vmem>>, vector<1x1x512x512xbf16>
    %8 = vector.shape_cast %7 : vector<1x1x512x512xbf16> to vector<512x512xbf16>
    %cst = arith.constant dense<0.000000e+00> : vector<8x512xf32>
    %9 = tpu.matmul %6, %8, %cst {dimension_numbers = #tpu.dot_dimension_numbers<[1], [0], [0], [1], [0, 0, 1, 1], [], []>} : vector<8x512xbf16>, vector<512x512xbf16>, vector<8x512xf32> -> vector<8x512xf32>
    %10 = vector.extract_strided_slice %5 {offsets = [0, 0], sizes = [1, 512], strides = [1, 1]} : vector<2x512xf32> to vector<1x512xf32>
    %11 = vector.broadcast %10 : vector<1x512xf32> to vector<8x512xf32>
    %12 = arith.addf %9, %11 : vector<8x512xf32>
    %cst_9 = arith.constant 0.000000e+00 : f32
    %13 = vector.broadcast %cst_9 : f32 to vector<8x512xf32>
    %14 = arith.maximumf %12, %13 : vector<8x512xf32>
    %15 = arith.truncf %14 : vector<8x512xf32> to vector<8x512xbf16>
    %c0_10 = arith.constant 0 : index
    %c1 = arith.constant 1 : index
    %c0_11 = arith.constant 0 : index
    %c0_12 = arith.constant 0 : index
    %16 = vector.load %arg5[%c0_10, %c1, %c0_11, %c0_12] : memref<1x2x512x512xbf16, #tpu.memory_space<vmem>>, vector<1x1x512x512xbf16>
    %17 = vector.shape_cast %16 : vector<1x1x512x512xbf16> to vector<512x512xbf16>
    %cst_13 = arith.constant dense<0.000000e+00> : vector<8x512xf32>
    %18 = tpu.matmul %15, %17, %cst_13 {dimension_numbers = #tpu.dot_dimension_numbers<[1], [0], [0], [1], [0, 0, 1, 1], [], []>} : vector<8x512xbf16>, vector<512x512xbf16>, vector<8x512xf32> -> vector<8x512xf32>
    %19 = vector.extract_strided_slice %5 {offsets = [1, 0], sizes = [1, 512], strides = [1, 1]} : vector<2x512xf32> to vector<1x512xf32>
    %20 = vector.broadcast %19 : vector<1x512xf32> to vector<8x512xf32>
    %21 = arith.addf %18, %20 : vector<8x512xf32>
    %22 = arith.addf %3, %21 : vector<8x512xf32>
    %cst_14 = arith.constant 0.000000e+00 : f32
    %23 = vector.broadcast %cst_14 : f32 to vector<8x512xf32>
    %24 = arith.maximumf %22, %23 : vector<8x512xf32>
    %c0_15 = arith.constant 0 : index
    %c0_16 = arith.constant 0 : index
    %25 = vector.load %arg10[%c0_15, %c0_16] : memref<8x512xf32, #tpu.memory_space<vmem>>, vector<8x512xf32>
    tpu.vector_store %arg10[%c0_15, %c0_16], %24 {strides = array<i32>} : memref<8x512xf32, #tpu.memory_space<vmem>>, vector<8x512xf32>,
    %c4_i32 = arith.constant 4 : i32
    %26 = arith.cmpi eq, %arg1, %c4_i32 : i32
    %27 = arith.extui %26 : i1 to i32
    %c0_i32_17 = arith.constant 0 : i32
    %28 = arith.cmpi ne, %27, %c0_i32_17 : i32
    scf.if %28 {
      %29 = arith.truncf %24 : vector<8x512xf32> to vector<8x512xbf16>
      %c0_18 = arith.constant 0 : index
      %c0_19 = arith.constant 0 : index
      %30 = vector.load %arg7[%c0_18, %c0_19] : memref<512x512xbf16, #tpu.memory_space<vmem>>, vector<512x512xbf16>
      %cst_20 = arith.constant dense<0.000000e+00> : vector<8x512xf32>
      %31 = tpu.matmul %29, %30, %cst_20 {dimension_numbers = #tpu.dot_dimension_numbers<[1], [0], [0], [1], [0, 0, 1, 1], [], []>} : vector<8x512xbf16>, vector<512x512xbf16>, vector<8x512xf32> -> vector<8x512xf32>
      %c0_21 = arith.constant 0 : index
      %c0_22 = arith.constant 0 : index
      %32 = vector.load %arg8[%c0_21, %c0_22] : memref<1x512xf32, #tpu.memory_space<vmem>>, vector<1x512xf32>
      %33 = vector.broadcast %32 : vector<1x512xf32> to vector<8x512xf32>
      %34 = arith.addf %31, %33 : vector<8x512xf32>
      %35 = arith.mulf %34, %34 : vector<8x512xf32>
      %cst_23 = arith.constant dense<0.000000e+00> : vector<8xf32>
      %36 = vector.multi_reduction <add>, %35, %cst_23 [1] : vector<8x512xf32> to vector<8xf32>
      %37 = vector.shape_cast %36 : vector<8xf32> to vector<8x1xf32>
      %cst_24 = arith.constant 1.000000e-24 : f32
      %38 = vector.broadcast %cst_24 : f32 to vector<8x1xf32>
      %39 = arith.maximumf %37, %38 : vector<8x1xf32>
      %40 = math.rsqrt %39 : vector<8x1xf32>
      %41 = vector.broadcast %40 : vector<8x1xf32> to vector<8x512xf32>
      %42 = arith.mulf %34, %41 : vector<8x512xf32>
      %c0_25 = arith.constant 0 : index
      %c0_26 = arith.constant 0 : index
      %43 = vector.load %arg9[%c0_25, %c0_26] : memref<8x512xf32, #tpu.memory_space<vmem>>, vector<8x512xf32>
      tpu.vector_store %arg9[%c0_25, %c0_26], %42 {strides = array<i32>} : memref<8x512xf32, #tpu.memory_space<vmem>>, vector<8x512xf32>,
    } else {
    }
    return
  }
  func.func @transform_0(%arg0: i32, %arg1: i32) -> (i32, i32) {
    %c0_i32 = arith.constant 0 : i32
    %c0_i32_0 = arith.constant 0 : i32
    return %arg0, %c0_i32 : i32, i32
  }
  func.func @transform_1(%arg0: i32, %arg1: i32) -> (i32, i32) {
    %c0_i32 = arith.constant 0 : i32
    %c0_i32_0 = arith.constant 0 : i32
    %c0_i32_1 = arith.constant 0 : i32
    return %c0_i32, %c0_i32_0 : i32, i32
  }
  func.func @transform_2(%arg0: i32, %arg1: i32) -> (i32, i32) {
    %c0_i32 = arith.constant 0 : i32
    %c0_i32_0 = arith.constant 0 : i32
    %c0_i32_1 = arith.constant 0 : i32
    return %c0_i32, %c0_i32_0 : i32, i32
  }
  func.func @transform_3(%arg0: i32, %arg1: i32) -> (i32, i32, i32, i32) {
    %c0_i32 = arith.constant 0 : i32
    %c0_i32_0 = arith.constant 0 : i32
    %c0_i32_1 = arith.constant 0 : i32
    %c0_i32_2 = arith.constant 0 : i32
    return %arg1, %c0_i32, %c0_i32_0, %c0_i32_1 : i32, i32, i32, i32
  }
  func.func @transform_4(%arg0: i32, %arg1: i32) -> (i32, i32, i32) {
    %c0_i32 = arith.constant 0 : i32
    %c0_i32_0 = arith.constant 0 : i32
    %c0_i32_1 = arith.constant 0 : i32
    return %arg1, %c0_i32, %c0_i32_0 : i32, i32, i32
  }
  func.func @transform_5(%arg0: i32, %arg1: i32) -> (i32, i32) {
    %c0_i32 = arith.constant 0 : i32
    %c0_i32_0 = arith.constant 0 : i32
    %c0_i32_1 = arith.constant 0 : i32
    return %c0_i32, %c0_i32_0 : i32, i32
  }
  func.func @transform_6(%arg0: i32, %arg1: i32) -> (i32, i32) {
    %c0_i32 = arith.constant 0 : i32
    %c0_i32_0 = arith.constant 0 : i32
    %c0_i32_1 = arith.constant 0 : i32
    return %c0_i32, %c0_i32_0 : i32, i32
  }
  func.func @transform_7(%arg0: i32, %arg1: i32) -> (i32, i32) {
    %c0_i32 = arith.constant 0 : i32
    %c0_i32_0 = arith.constant 0 : i32
    return %arg0, %c0_i32 : i32, i32
  }
}

</mosaic_0001>

<bundles_post_ra>
// kernel: tpu_custom_call.1
= control target key start
LH: loop header
LB: loop body
LE: loop exit
PB: predicated region body
PF: predicated region fallthrough
CT: control target
= control target key end

     0   :  { %s7091_s0 = inlined_call_operand.hbm [shape: f32[8,512], index: 0, kind: input, shape index: {}]   ;;  %s7092_s1 = inlined_call_operand.hbm [shape: bf16[512,512], index: 1, kind: input, shape index: {}]   ;;  %s7093_s2 = inlined_call_operand.hbm [shape: f32[1,512], index: 2, kind: input, shape index: {}]   ;;  %s7094_s3 = inlined_call_operand.hbm [shape: bf16[5,2,512,512], index: 3, kind: input, shape index: {}]   ;;  %s7095_s4 = inlined_call_operand.hbm [shape: f32[5,2,512], index: 4, kind: input, shape index: {}]   ;;  %s7096_s5 = inlined_call_operand.hbm [shape: bf16[512,512], index: 5, kind: input, shape index: {}]   ;;  %s7097_s6 = inlined_call_operand.hbm [shape: f32[1,512], index: 6, kind: input, shape index: {}]   ;;  %s7098_s7 = inlined_call_operand.hbm [shape: f32[8,512], index: 7, kind: output, shape index: {}]  }
   0x1   :  { %7111 = sst [smem:[#allocation23_spill]] %s7092_s1 }
   0x2   :  { %7112 = sst [smem:[#allocation24_spill]] %s7094_s3 }
   0x3   :  { %7113 = sst [smem:[#allocation25_spill]] %s7096_s5 }
   0x4   :  { %12 = vsyncpa [#allocation4], 0 }
   0x5   :  { %13 = vsyncpa [#allocation7], 0 }
   0x6   :  { %14 = vsyncpa [#allocation10], 0 }
   0x7   :  { %16 = vsyncpa [#allocation10 + $0x1], 0 }
   0x8   :  { %17 = vsyncpa [#allocation13], 0 }
   0x9   :  { %18 = vsyncpa [#allocation5], 0  ;;  %s6420_s24 = smov 0   ;;  %s6422_s25 = smov 0  }
   0xa   :  { %s6424_s26 = smov 0   ;;  %s6426_s27 = smov 0  }
   0xb   :  { %s6428_s28 = smov 0   ;;  %s6430_s29 = smov 0  }
   0xc LB: > { %s6370_s30 = smov [#allocation6]   ;;  %s6451_s9 = sadd.s32 4294967295, %s6368_s29   ;;  %s6368_s29 = sphi %s6430_s29, %s24_s29   ;;  %s6364_s28 = sphi %s6428_s28, %s7146_s28   ;;  %s6360_s27 = sphi %s6426_s27, %s7145_s27   ;;  %s6356_s26 = sphi %s6424_s26, %s7144_s26   ;;  %s6352_s25 = sphi %s6422_s25, %s7143_s25   ;;  %s6348_s24 = sphi %s6420_s24, %s7142_s24  }
   0xd   : > { %s255_s8 = sshll.u32 %s6370_s30, 4  ;;  %p4478_p0 = scmp.ge.s32.totalorder %s6368_s29, 1  ;;  %s6456_s8 = int_to_ptr.vmem [resolvable:$true] %s255_s8 }
   0xe   : > { %p7101_p1 = scmp.eq.s32.totalorder %s6451_s9, 0  ;;  %p229_p2 = scmp.lt.s32.totalorder %s6368_s29, 6 }
   0xf   : > { %s6371_s11 = smov [#allocation12]   ;;  %s7116_s1 = sld [smem:[#allocation23_spill]] }
  0x10   : > { %p6458_p3 = pnand %p4478_p0, %p229_p2  ;;  %s279_s12 = sshll.u32 %s6371_s11, 4  ;;  %s6470_s12 = int_to_ptr.vmem [resolvable:$true] %s279_s12 }
  0x12   : > { %s7114_s10 = scalar_select %p6458_p3, 1, 0 }
  0x13   : > { %p5211_p4 = pneg %p6458_p3 }
  0x15   : > { %p6466_p5 = pnand %p5211_p4, %p7101_p1  ;;  %s6076_s16 = scalar_lea.hbm %s7116_s1, 16384 }
  0x16   : > { %p6077_p6 = scmp.ne.s32.totalorder %s7116_s1, %s6076_s16  ;;  %p6083_p10 = scmp.lt.u32.totalorder %s6076_s16, %s7116_s1 }
  0x17   : > { %s7115_s13 = scalar_select %p6466_p5, 1, 0 }
  0x18   : > { %p6480_p7 = pneg %p6466_p5 }
  0x1a   : > { %p6079_p8 = pnand %p6480_p7, %p6077_p6 }
  0x1c   : > { %p6080_p9 = pneg %p6079_p8 }
  0x1e   : > { %p6085_p11 = pnand %p6083_p10, %p6080_p9 }
  0x20   : > { %6088 = shalt.err (!%p6085_p11)
}
  0x21   : > { %s6089_s22 = scalar_lea.vmem %s6456_s8, 16384  ;;  %p6097_p2 = scmp.lt.s32.totalorder %s6456_s8, %s6456_s8 }
  0x22   : > { %p6090_p12 = scmp.ne.s32.totalorder %s6456_s8, %s6089_s22  ;;  %p6098_p4 = scmp.lt.s32.totalorder %s6089_s22, %s6089_s22 }
  0x24   : > { %p6092_p13 = pnand %p6090_p12, %p6480_p7  ;;  %p6099_p6 = por %p6098_p4, %p6097_p2 }
  0x26   : > { %p6093_p0 = pneg %p6092_p13 }
  0x28   : > { %p6100_p8 = pnand %p6099_p6, %p6093_p0 }
  0x2a   : > { %6103 = shalt.err (!%p6100_p8)
}
  0x2b   : > { %s7099_s23 = smov 256   ;;  %s7100_s30 = smov 16  }
  0x2c   : > { %5217 = dma.hbm_to_vmem [thread:$0]  (!%p6466_p5), %s7116_s1, 16384, %s6456_s8, [#allocation7], %s7099_s23, %s7099_s23, %s7100_s30  }
  0x2d   : > { %s7118_s5 = sld [smem:[#allocation25_spill]] }
  0x33   : > { %s6104_s17 = scalar_lea.hbm %s7118_s5, 16384 }
  0x34   : > { %p6105_p9 = scmp.ne.s32.totalorder %s7118_s5, %s6104_s17  ;;  %p6111_p12 = scmp.lt.u32.totalorder %s6104_s17, %s7118_s5 }
  0x36   : > { %p6107_p10 = pnand %p6105_p9, %p6480_p7 }
  0x38   : > { %p6108_p11 = pneg %p6107_p10 }
  0x3a   : > { %p6113_p13 = pnand %p6111_p12, %p6108_p11 }
  0x3c   : > { %6116 = shalt.err (!%p6113_p13)
}
  0x3d   : > { %s6117_s8 = scalar_lea.vmem %s6470_s12, 16384  ;;  %p6125_p6 = scmp.lt.s32.totalorder %s6470_s12, %s6470_s12 }
  0x3e   : > { %p6118_p0 = scmp.ne.s32.totalorder %s6470_s12, %s6117_s8  ;;  %p6126_p8 = scmp.lt.s32.totalorder %s6117_s8, %s6117_s8 }
  0x40   : > { %p6120_p2 = pnand %p6118_p0, %p6480_p7  ;;  %p6127_p9 = por %p6126_p8, %p6125_p6 }
  0x42   : > { %p6121_p4 = pneg %p6120_p2 }
  0x44   : > { %p6128_p10 = pnand %p6127_p9, %p6121_p4 }
  0x46   : > { %6131 = shalt.err (!%p6128_p10)
}
  0x47   : > { %5223 = dma.hbm_to_vmem [thread:$0]  (!%p6466_p5), %s7118_s5, 16384, %s6470_s12, [#allocation13], %s7099_s23, %s7099_s23, %s7100_s30  }
  0x48   : > { %s33_s15 = sadd.s32 1, %s6364_s28  ;;  %s111_s16 = sadd.s32 1, %s6356_s26 }
  0x49   : > { %p34_p11 = scmp.ge.s32.totalorder %s33_s15, 5  ;;  %p118_p12 = scmp.ne.s32.totalorder %s6356_s26, %s6352_s25 }
  0x4a   : > { %p119_p13 = scmp.eq.s32.totalorder %s6368_s29, 0  ;;  %p124_p0 = scmp.ne.s32.totalorder %s6352_s25, %s6348_s24 }
  0x4b   : > { %s7148_s15 = smov (%p34_p11, %s33_s15), 0  ;;  %p5239_p6 = scmp.lt.s32.totalorder %s6368_s29, 5 }
  0x4c   : > { %7119 = sst [smem:[#allocation21_spill]] %s7148_s15  ;;  %p6539_p2 = por %p119_p13, %p118_p12 }
  0x4d   : > { %p6545_p4 = por %p7101_p1, %p124_p0  ;;  %s108_s12 = ssub.s32 %s6364_s28, %s7148_s15 }
  0x4e   : > { %p109_p8 = scmp.eq.s32.totalorder %s108_s12, 0  ;;  %s304_s20 = sand.u32 1, %s6368_s29  }
  0x4f   : > { %s7121_s18 = scalar_select %p6545_p4, 1, 0 }
  0x50   : > { %s7106_s21 = sand.u32 1, %s6356_s26   ;;  %s5145_s8 = sshll.u32 %s6364_s28, 15 }
  0x51   : > { %s6555_s22 = scalar_select %p109_p8, %s6356_s26, %s111_s16  }
  0x52   : > { %s4485_s24 = sshll.u32 %s7106_s21, 11  ;;  %s7123_s3 = sld [smem:[#allocation24_spill]] }
  0x53   : > { %7122 = sst [smem:[#allocation22_spill]] %s6555_s22  ;;  %s308_s30 = scalar_lea.vmem [#allocation9], %s4485_s24 }
  0x54   : > { %s315_s1 = sshll.u32 %s308_s30, 4  ;;  %p6567_p9 = pnand %p5239_p6, %p6539_p2  ;;  %s6571_s1 = int_to_ptr.vmem [resolvable:$true] %s315_s1 }
  0x55   : > { %s6573_s16 = scalar_lea.sflag [#allocation10], %s304_s20 }
  0x56   : > { %s7124_s12 = scalar_select %p6567_p9, 1, 0 }
  0x57   : > { %p7108_p11 = pneg %p6567_p9 }
  0x58   : > { %s6563_s23 = scalar_lea.hbm %s7123_s3, %s5145_s8  ;;  %s6137_s24 = scalar_lea.hbm %s7123_s3, 163840 }
  0x59   : > { %s6132_s11 = scalar_lea.hbm %s6563_s23, 32768  ;;  %p6138_p0 = scmp.lt.u32.totalorder %s6563_s23, %s7123_s3 }
  0x5a   : > { %p6133_p10 = scmp.ne.s32.totalorder %s6563_s23, %s6132_s11  ;;  %p6139_p2 = scmp.lt.u32.totalorder %s6137_s24, %s6132_s11 }
  0x5b   : > { %p6141_p8 = scmp.lt.u32.totalorder %s6132_s11, %s6563_s23 }
  0x5c   : > { %p6135_p12 = pnand %p7108_p11, %p6133_p10  ;;  %p6140_p6 = por %p6139_p2, %p6138_p0 }
  0x5e   : > { %p6136_p13 = pneg %p6135_p12  ;;  %p6142_p1 = por %p6141_p8, %p6140_p6 }
  0x60   : > { %p6143_p4 = pnand %p6142_p1, %p6136_p13 }
  0x62   : > { %6146 = shalt.err (!%p6143_p4)
}
  0x63   : > { %s6147_s20 = scalar_lea.vmem %s6571_s1, 32768  ;;  %s6374_s30 = smov [#allocation9]  }
  0x64   : > { %p6148_p10 = scmp.ne.s32.totalorder %s6571_s1, %s6147_s20  ;;  %s6152_s17 = sshll.u32 %s6374_s30, 4  ;;  %s6153_s17 = int_to_ptr.vmem [resolvable:$false] %s6152_s17 }
  0x65   : > { %s6154_s8 = scalar_lea.vmem %s6153_s17, 65536  ;;  %p6155_p5 = scmp.lt.s32.totalorder %s6571_s1, %s6153_s17 }
  0x66   : > { %p6150_p12 = pnand %p6148_p10, %p7108_p11  ;;  %p6156_p0 = scmp.lt.s32.totalorder %s6154_s8, %s6147_s20 }
  0x68   : > { %p6151_p3 = pneg %p6150_p12  ;;  %p6157_p2 = por %p6156_p0, %p6155_p5 }
  0x6a   : > { %p6158_p6 = pnand %p6157_p2, %p6151_p3 }
  0x6c   : > { %6161 = shalt.err (!%p6158_p6)
}
  0x6d   : > { %s7125_s11 = smov 16   ;;  %s7126_s24 = smov 256  }
  0x6e   : > { %5230 = dma.hbm_to_vmem [thread:$0]  (!%p6567_p9), %s6563_s23, 32768, %s6571_s1, %s6573_s16, %s7126_s24, %s7126_s24, %s7125_s11  }
  0x6f   : > { %s6375_s14 = smov [#allocation3]   ;;  %s6376_s30 = smov [#allocation8]  }
  0x70   : > { %s245_s21 = sshll.u32 %s6375_s14, 4  ;;  %s269_s3 = sshll.u32 %s6376_s30, 4  ;;  %s246_s21 = int_to_ptr.vmem [resolvable:$true] %s245_s21  ;;  %s6604_s3 = int_to_ptr.vmem [resolvable:$true] %s269_s3 }
  0x71   : > { %s6162_s8 = scalar_lea.hbm %s7091_s0, 512 }
  0x72   : > { %p6163_p1 = scmp.ne.s32.totalorder %s7091_s0, %s6162_s8  ;;  %p6169_p4 = scmp.lt.u32.totalorder %s6162_s8, %s7091_s0 }
  0x74   : > { %p6165_p3 = pnand %p6163_p1, %p6480_p7 }
  0x76   : > { %p6166_p5 = pneg %p6165_p3 }
  0x78   : > { %p6171_p13 = pnand %p6169_p4, %p6166_p5 }
  0x7a   : > { %6174 = shalt.err (!%p6171_p13)
}
  0x7b   : > { %s6175_s23 = scalar_lea.vmem %s246_s21, 512  ;;  %p6183_p0 = scmp.lt.s32.totalorder %s246_s21, %s246_s21 }
  0x7c   : > { %p6176_p8 = scmp.ne.s32.totalorder %s246_s21, %s6175_s23  ;;  %p6184_p2 = scmp.lt.s32.totalorder %s6175_s23, %s6175_s23 }
  0x7e   : > { %p6178_p10 = pnand %p6176_p8, %p6480_p7  ;;  %p6185_p6 = por %p6184_p2, %p6183_p0 }
  0x80   : > { %p6179_p12 = pneg %p6178_p10 }
  0x82   : > { %p6186_p11 = pnand %p6185_p6, %p6179_p12 }
  0x84   : > { %6189 = shalt.err (!%p6186_p11)
}
  0x85   : > { %p7127_p1 = scmp.ne.s32.totalorder %s7115_s13, 0  ;;  %s6190_s24 = scalar_lea.hbm %s7093_s2, 64 }
  0x86   : > { %p6191_p3 = scmp.ne.s32.totalorder %s7093_s2, %s6190_s24  ;;  %p6197_p11 = scmp.lt.u32.totalorder %s6190_s24, %s7093_s2 }
  0x87   : > { %5214 = dma.hbm_to_vmem [thread:$0]  (!%p7127_p1), %s7091_s0, 512, %s246_s21, [#allocation4]  }
  0x88   : > { %p6193_p5 = pnand %p6191_p3, %p6480_p7 }
  0x8a   : > { %p6194_p4 = pneg %p6193_p5 }
  0x8c   : > { %p6199_p13 = pnand %p6197_p11, %p6194_p4 }
  0x8e   : > { %6202 = shalt.err (!%p6199_p13)
}
  0x8f   : > { %s6203_s21 = scalar_lea.vmem %s6604_s3, 64  ;;  %p6211_p0 = scmp.lt.s32.totalorder %s6604_s3, %s6604_s3 }
  0x90   : > { %p6204_p8 = scmp.ne.s32.totalorder %s6604_s3, %s6203_s21  ;;  %p6212_p2 = scmp.lt.s32.totalorder %s6203_s21, %s6203_s21 }
  0x92   : > { %p6206_p10 = pnand %p6204_p8, %p6480_p7  ;;  %p6213_p6 = por %p6212_p2, %p6211_p0 }
  0x94   : > { %p6207_p12 = pneg %p6206_p10 }
  0x96   : > { %p6214_p3 = pnand %p6213_p6, %p6207_p12 }
  0x98   : > { %6217 = shalt.err (!%p6214_p3)
}
  0x99   : > { %5220 = dma.hbm_to_vmem [thread:$0]  (!%p7127_p1), %s7093_s2, 64, %s6604_s3, [#allocation7]  }
  0x9a   : > { %s7128_s23 = sand.u32 1, %s6356_s26   ;;  %s6377_s15 = smov [#allocation14]  }
  0x9b   : > { %s4488_s5 = sshll.u32 %s7128_s23, 3  ;;  %s293_s22 = sshll.u32 %s6377_s15, 4  ;;  %s294_s22 = int_to_ptr.vmem [resolvable:$true] %s293_s22 }
  0x9c   : > { %s5146_s11 = sshll.u32 %s6364_s28, 7  ;;  %s6218_s30 = scalar_lea.hbm %s7097_s6, 64 }
  0x9d   : > { %p6219_p5 = scmp.ne.s32.totalorder %s7097_s6, %s6218_s30  ;;  %p6225_p13 = scmp.lt.u32.totalorder %s6218_s30, %s7097_s6 }
  0x9f   : > { %p6221_p4 = pnand %p6219_p5, %p6480_p7 }
  0xa1   : > { %p6222_p11 = pneg %p6221_p4 }
  0xa3   : > { %p6227_p8 = pnand %p6225_p13, %p6222_p11 }
  0xa5   : > { %6230 = shalt.err (!%p6227_p8)
}
  0xa6   : > { %s6231_s3 = scalar_lea.vmem %s294_s22, 64  ;;  %p6239_p2 = scmp.lt.s32.totalorder %s294_s22, %s294_s22 }
  0xa7   : > { %p6232_p10 = scmp.ne.s32.totalorder %s294_s22, %s6231_s3  ;;  %p6240_p6 = scmp.lt.s32.totalorder %s6231_s3, %s6231_s3 }
  0xa9   : > { %p6234_p12 = pnand %p6232_p10, %p6480_p7  ;;  %p6241_p3 = por %p6240_p6, %p6239_p2 }
  0xab   : > { %p6235_p0 = pneg %p6234_p12 }
  0xad   : > { %p6242_p9 = pnand %p6241_p3, %p6235_p0 }
  0xaf   : > { %6245 = shalt.err (!%p6242_p9)
}
  0xb0   : > { %5226 = dma.hbm_to_vmem [thread:$0]  (!%p7127_p1), %s7097_s6, 64, %s294_s22, [#allocation13]  }
  0xb1   : > { %s6671_s14 = scalar_lea.hbm %s7095_s4, %s5146_s11  ;;  %s329_s19 = scalar_lea.vmem [#allocation11], %s4488_s5 }
  0xb2   : > { %s337_s30 = sshll.u32 %s329_s19, 4  ;;  %s6246_s20 = scalar_lea.hbm %s6671_s14, 128  ;;  %s338_s30 = int_to_ptr.vmem [resolvable:$true] %s337_s30 }
  0xb3   : > { %p6247_p7 = scmp.ne.s32.totalorder %s6671_s14, %s6246_s20  ;;  %p7129_p9 = scmp.ne.s32.totalorder %s7124_s12, 0 }
  0xb4   : > { %s6251_s17 = scalar_lea.hbm %s7095_s4, 640  ;;  %p6252_p1 = scmp.lt.u32.totalorder %s6671_s14, %s7095_s4 }
  0xb5   : > { %p7130_p5 = pneg %p7129_p9  ;;  %p6253_p13 = scmp.lt.u32.totalorder %s6251_s17, %s6246_s20 }
  0xb6   : > { %p6255_p10 = scmp.lt.u32.totalorder %s6246_s20, %s6671_s14 }
  0xb7   : > { %p6249_p4 = pnand %p6247_p7, %p7130_p5  ;;  %p6254_p8 = por %p6253_p13, %p6252_p1 }
  0xb9   : > { %p6250_p11 = pneg %p6249_p4  ;;  %p6256_p12 = por %p6255_p10, %p6254_p8 }
  0xbb   : > { %p6257_p0 = pnand %p6256_p12, %p6250_p11 }
  0xbd   : > { %6260 = shalt.err (!%p6257_p0)
}
  0xbe   : > { %s6261_s5 = scalar_lea.vmem %s338_s30, 128  ;;  %p7131_p6 = pmov %p7130_p5 }
  0xbf   : > { %p6262_p2 = scmp.ne.s32.totalorder %s338_s30, %s6261_s5  ;;  %s6378_s8 = smov [#allocation11]  }
  0xc0   : > { %s6266_s3 = sshll.u32 %s6378_s8, 4  ;;  %s6267_s3 = int_to_ptr.vmem [resolvable:$false] %s6266_s3 }
  0xc1   : > { %p6264_p3 = pnand %p6262_p2, %p7131_p6  ;;  %s6268_s1 = scalar_lea.vmem %s6267_s3, 256 }
  0xc2   : > { %p6269_p5 = scmp.lt.s32.totalorder %s338_s30, %s6267_s3  ;;  %p6270_p4 = scmp.lt.s32.totalorder %s6268_s1, %s6261_s5 }
  0xc3   : > { %p6265_p7 = pneg %p6264_p3 }
  0xc4   : > { %p6271_p1 = por %p6270_p4, %p6269_p5 }
  0xc6   : > { %p6272_p13 = pnand %p6271_p1, %p6265_p7 }
  0xc8   : > { %6275 = shalt.err (!%p6272_p13)
}
  0xc9   : > { %5233 = dma.hbm_to_vmem [thread:$0]  (!%p7129_p9), %s6671_s14, 128, %s338_s30, %s6573_s16  }
  0xca   : > { %p7132_p11 = scmp.ne.s32.totalorder %s7114_s10, 0 }
  0xcb   : > { %p7133_p8 = scmp.eq.s32.totalorder (!%p7132_p11), %s6451_s9, 0 }
  0xcc   : > { %346 = sbr.rel (%p7132_p11) target bundleno = 1732 (0x6c4), region = 48 }
  0xd3   : > { %6327 = dma.done.wait (%p7133_p8), [#allocation4], 512   ;;  %p7134_p10 = pmov %p7133_p8 }
  0xd4   : > { %p7135_p12 = pmov %p7133_p8 }
  0xd5   : > { %6329 = vsyncadd (%p7134_p10), [#allocation4], 4294966784 }
  0xd6   : > { %6331 = dma.done.wait (%p7135_p12), [#allocation7], 16448   ;;  %p7136_p0 = pmov %p7133_p8 }
  0xd7   : > { %s360_s12 = sand.u32 1, %s6451_s9   ;;  %s362_s16 = sand.u32 1, %s6352_s25  }
  0xd8   : > { %6333 = vsyncadd (%p7136_p0), [#allocation7], 4294950848  ;;  %s4495_s23 = sshll.u32 %s362_s16, 11  ;;  %s361_s10 = scalar_lea.sflag [#allocation10], %s360_s12 }
  0xd9   : > { %s6705_s15 = scalar_lea.vmem [#allocation9], %s4495_s23  ;;  %p7137_p9 = scmp.ne.s32.totalorder %s7121_s18, 0 }
  0xdb   : > { %6335 = dma.done.wait (%p7137_p9), %s361_s10, 32896  }
  0xdc   : > { %6337 = vsyncadd (%p7137_p9), %s361_s10, 4294934400  ;;  %s6711_s24 = sshll.u32 %s362_s16, 3  ;;  %p7138_p2 = pmov %p7136_p0 }
  0xdd   : > { %s373_s14 = scalar_lea.vmem [#allocation11], %s6711_s24 }
  0xde   : > { %6339 = dma.done.wait (%p7138_p2), [#allocation13], 16448   ;;  %p7139_p6 = pmov %p7136_p0 }
  0xdf   : > { %p4499_p3 = scmp.ne.s32.totalorder %s6360_s27, 0 }
  0xe0   : > { %6341 = vsyncadd (%p7139_p6), [#allocation13], 4294950848  ;;  %v5303_v0 = vld [vmem:[#allocation6 + $0x4] ss:$16 sps:$4 sm:$0xff] (!%p4499_p3)   ;;  %v5305_v1 = vld [vmem:[#allocation6 + $0xc] ss:$16 sps:$4 sm:$0xff] (!%p4499_p3)  }
  0xe1   : > { %415 = sbr.rel (%p4499_p3) target bundleno = 571 (0x23b), region = 80  ;;  %1214 = vmatprep.subr.bf16.mxu0 (!%p4499_p3), %v5303_v0  ;;  %v5307_v2 = vld [vmem:[#allocation6] ss:$16 sps:$4 sm:$0xff] (!%p4499_p3)   ;;  %v5308_v3 = vld [vmem:[#allocation6 + $0x8] ss:$16 sps:$4 sm:$0xff] (!%p4499_p3)   ;;  %1296 = vmatprep.subr.bf16.mxu1 (!%p4499_p3), %v5305_v1 }
  0xe2   : > { %v5309_v4 = vld [vmem:[#allocation6 + $0x24] ss:$16 sps:$4 sm:$0xff] (!%p4499_p3)   ;;  %1215 = vmatpush1.bf16.msra.mxu0 (!%p4499_p3), %v5307_v2  ;;  %1297 = vmatpush1.bf16.msra.mxu1 (!%p4499_p3), %v5308_v3  ;;  %v5311_v5 = vld [vmem:[#allocation6 + $0x2c] ss:$16 sps:$4 sm:$0xff] (!%p4499_p3)   ;;  %v5313_v6 = vld [vmem:[#allocation6 + $0x20] ss:$16 sps:$4 sm:$0xff] (!%p4499_p3)  }
  0xe3   : > { %1216 = vmatprep.subr.bf16.mxu0 (!%p4499_p3), %v5309_v4  ;;  %v5314_v7 = vld [vmem:[#allocation6 + $0x28] ss:$16 sps:$4 sm:$0xff] (!%p4499_p3)   ;;  %1298 = vmatprep.subr.bf16.mxu1 (!%p4499_p3), %v5311_v5  ;;  %v5315_v8 = vld [vmem:[#allocation6 + $0x44] ss:$16 sps:$4 sm:$0xff] (!%p4499_p3)   ;;  %v5317_v9 = vld [vmem:[#allocation6 + $0x4c] ss:$16 sps:$4 sm:$0xff] (!%p4499_p3)  }
  0xe4   : > { %v5319_v10 = vld [vmem:[#allocation6 + $0x40] ss:$16 sps:$4 sm:$0xff] (!%p4499_p3)   ;;  %v5320_v11 = vld [vmem:[#allocation6 + $0x48] ss:$16 sps:$4 sm:$0xff] (!%p4499_p3)   ;;  %v5321_v12 = vld [vmem:[#allocation6 + $0x64] ss:$16 sps:$4 sm:$0xff] (!%p4499_p3)  }
  0xe5   : > { %v5323_v13 = vld [vmem:[#allocation6 + $0x6c] ss:$16 sps:$4 sm:$0xff] (!%p4499_p3)   ;;  %v5325_v14 = vld [vmem:[#allocation6 + $0x60] ss:$16 sps:$4 sm:$0xff] (!%p4499_p3)   ;;  %v5326_v15 = vld [vmem:[#allocation6 + $0x68] ss:$16 sps:$4 sm:$0xff] (!%p4499_p3)  }
  0xe6   : > { %1217 = vmatpush1.bf16.msra.mxu0 (!%p4499_p3), %v5313_v6  ;;  %1299 = vmatpush1.bf16.msra.mxu1 (!%p4499_p3), %v5314_v7  ;;  %v5327_v16 = vld [vmem:[#allocation6 + $0x84] ss:$16 sps:$4 sm:$0xff] (!%p4499_p3)   ;;  %v5329_v17 = vld [vmem:[#allocation6 + $0x8c] ss:$16 sps:$4 sm:$0xff] (!%p4499_p3)   ;;  %v5331_v18 = vld [vmem:[#allocation6 + $0x80] ss:$16 sps:$4 sm:$0xff] (!%p4499_p3)  }
  0xe7   : > { %1218 = vmatprep.subr.bf16.mxu0 (!%p4499_p3), %v5315_v8  ;;  %1300 = vmatprep.subr.bf16.mxu1 (!%p4499_p3), %v5317_v9  ;;  %v5332_v19 = vld [vmem:[#allocation6 + $0x88] ss:$16 sps:$4 sm:$0xff] (!%p4499_p3)   ;;  %v5333_v20 = vld [vmem:[#allocation6 + $0xa4] ss:$16 sps:$4 sm:$0xff] (!%p4499_p3)   ;;  %v5335_v21 = vld [vmem:[#allocation6 + $0xac] ss:$16 sps:$4 sm:$0xff] (!%p4499_p3)  }
  0xe8   : > { %v5337_v22 = vld [vmem:[#allocation6 + $0xa0] ss:$16 sps:$4 sm:$0xff]   ;;  %v5338_v23 = vld [vmem:[#allocation6 + $0xa8] ss:$16 sps:$4 sm:$0xff]   ;;  %v5339_v24 = vld [vmem:[#allocation6 + $0xc4] ss:$16 sps:$4 sm:$0xff]  }
  0xe9   : > { %v5341_v25 = vld [vmem:[#allocation6 + $0xcc] ss:$16 sps:$4 sm:$0xff]   ;;  %v5343_v26 = vld [vmem:[#allocation6 + $0xc0] ss:$16 sps:$4 sm:$0xff]   ;;  %v5344_v27 = vld [vmem:[#allocation6 + $0xc8] ss:$16 sps:$4 sm:$0xff]  }
  0xea   : > { %1219 = vmatpush1.bf16.msra.mxu0 %v5319_v10  ;;  %1301 = vmatpush1.bf16.msra.mxu1 %v5320_v11  ;;  %v5345_v28 = vld [vmem:[#allocation6 + $0xe4] ss:$16 sps:$4 sm:$0xff]   ;;  %v5347_v29 = vld [vmem:[#allocation6 + $0xec] ss:$16 sps:$4 sm:$0xff]   ;;  %v5349_v30 = vld [vmem:[#allocation6 + $0xe0] ss:$16 sps:$4 sm:$0xff]  }
  0xeb   : > { %1220 = vmatprep.subr.bf16.mxu0 %v5321_v12  ;;  %1302 = vmatprep.subr.bf16.mxu1 %v5323_v13  ;;  %v5350_v31 = vld [vmem:[#allocation6 + $0xe8] ss:$16 sps:$4 sm:$0xff]   ;;  %v5351_v32 = vld [vmem:[#allocation6 + $0x104] ss:$16 sps:$4 sm:$0xff]   ;;  %v5353_v33 = vld [vmem:[#allocation6 + $0x10c] ss:$16 sps:$4 sm:$0xff]  }
  0xec   : > { %v5355_v34 = vld [vmem:[#allocation6 + $0x100] ss:$16 sps:$4 sm:$0xff]   ;;  %v5356_v35 = vld [vmem:[#allocation6 + $0x108] ss:$16 sps:$4 sm:$0xff]   ;;  %v5357_v36 = vld [vmem:[#allocation6 + $0x124] ss:$16 sps:$4 sm:$0xff]  }
  0xed   : > { %v5359_v37 = vld [vmem:[#allocation6 + $0x12c] ss:$16 sps:$4 sm:$0xff]   ;;  %v5361_v38 = vld [vmem:[#allocation6 + $0x120] ss:$16 sps:$4 sm:$0xff]   ;;  %v5362_v39 = vld [vmem:[#allocation6 + $0x128] ss:$16 sps:$4 sm:$0xff]  }
  0xee   : > { %1221 = vmatpush1.bf16.msra.mxu0 %v5325_v14  ;;  %1303 = vmatpush1.bf16.msra.mxu1 %v5326_v15  ;;  %v5363_v40 = vld [vmem:[#allocation6 + $0x144] ss:$16 sps:$4 sm:$0xff]   ;;  %v5365_v41 = vld [vmem:[#allocation6 + $0x14c] ss:$16 sps:$4 sm:$0xff]   ;;  %v5367_v42 = vld [vmem:[#allocation6 + $0x140] ss:$16 sps:$4 sm:$0xff]  }
  0xef   : > { %1222 = vmatprep.subr.bf16.mxu0 %v5327_v16  ;;  %1304 = vmatprep.subr.bf16.mxu1 %v5329_v17  ;;  %v5368_v43 = vld [vmem:[#allocation6 + $0x148] ss:$16 sps:$4 sm:$0xff]   ;;  %v5369_v44 = vld [vmem:[#allocation6 + $0x164] ss:$16 sps:$4 sm:$0xff]   ;;  %v5371_v45 = vld [vmem:[#allocation6 + $0x16c] ss:$16 sps:$4 sm:$0xff]  }
  0xf0   : > { %v417_v46 = vld [vmem:[#allocation3 + $0x8] sm:$0xff]  ;;  %v5373_v47 = vld [vmem:[#allocation6 + $0x160] ss:$16 sps:$4 sm:$0xff]   ;;  %v5375_v50 = vld [vmem:[#allocation6 + $0x184] ss:$16 sps:$4 sm:$0xff]  }
  0xf1   : > { %v421_v48 = vpack.c.bf16 %v417_v46, %v417_v46  ;;  %v5374_v49 = vld [vmem:[#allocation6 + $0x168] ss:$16 sps:$4 sm:$0xff]   ;;  %v5377_v51 = vld [vmem:[#allocation6 + $0x18c] ss:$16 sps:$4 sm:$0xff]   ;;  %v5379_v52 = vld [vmem:[#allocation6 + $0x180] ss:$16 sps:$4 sm:$0xff]  }
  0xf2   : > { %1223 = vmatpush1.bf16.msra.mxu0 %v5331_v18  ;;  %1305 = vmatpush1.bf16.msra.mxu1 %v5332_v19  ;;  %v5380_v53 = vld [vmem:[#allocation6 + $0x188] ss:$16 sps:$4 sm:$0xff]   ;;  %v5381_v54 = vld [vmem:[#allocation6 + $0x1a4] ss:$16 sps:$4 sm:$0xff]   ;;  %v5383_v55 = vld [vmem:[#allocation6 + $0x1ac] ss:$16 sps:$4 sm:$0xff]  }
  0xf3   : > { %1224 = vmatprep.subr.bf16.mxu0 %v5333_v20  ;;  %1306 = vmatprep.subr.bf16.mxu1 %v5335_v21  ;;  %v5385_v56 = vld [vmem:[#allocation6 + $0x1a0] ss:$16 sps:$4 sm:$0xff]   ;;  %v5386_v57 = vld [vmem:[#allocation6 + $0x1a8] ss:$16 sps:$4 sm:$0xff]   ;;  %v5387_v58 = vld [vmem:[#allocation6 + $0x1c4] ss:$16 sps:$4 sm:$0xff]  }
  0xf4   : > { %1246 = vmatprep.mubr.bf16.mxu0 %v421_v48  ;;  %1328 = vmatprep.mubr.bf16.mxu1 %v421_v48  ;;  %v5389_v59 = vld [vmem:[#allocation6 + $0x1cc] ss:$16 sps:$4 sm:$0xff]   ;;  %v5391_v60 = vld [vmem:[#allocation6 + $0x1c0] ss:$16 sps:$4 sm:$0xff]   ;;  %v5392_v61 = vld [vmem:[#allocation6 + $0x1c8] ss:$16 sps:$4 sm:$0xff]  }
  0xf5   : > { %v5393_v62 = vld [vmem:[#allocation6 + $0x1e4] ss:$16 sps:$4 sm:$0xff]   ;;  %v5395_v63 = vld [vmem:[#allocation6 + $0x1ec] ss:$16 sps:$4 sm:$0xff]   ;;  %v5397_v0 = vld [vmem:[#allocation6 + $0x1e0] ss:$16 sps:$4 sm:$0xff]  }
  0xf6   : > { %1225 = vmatpush1.bf16.msra.mxu0 %v5337_v22  ;;  %1307 = vmatpush1.bf16.msra.mxu1 %v5338_v23  ;;  %v5398_v1 = vld [vmem:[#allocation6 + $0x1e8] ss:$16 sps:$4 sm:$0xff]   ;;  %v416_v2 = vld [vmem:[#allocation3] sm:$0xff]  ;;  %v5404_v4 = vld [vmem:[#allocation6 + $0x20c] ss:$16 sps:$4 sm:$0xff]  }
  0xf7   : > { %1226 = vmatprep.subr.bf16.mxu0 %v5339_v24  ;;  %1308 = vmatprep.subr.bf16.mxu1 %v5341_v25  ;;  %v5401_v3 = vld [vmem:[#allocation6 + $0x204] ss:$16 sps:$4 sm:$0xff]   ;;  %v420_v5 = vpack.c.bf16 %v416_v2, %v416_v2  ;;  %v5399_v6 = vld [vmem:[#allocation6 + $0x200] ss:$16 sps:$4 sm:$0xff]   ;;  %v5402_v7 = vld [vmem:[#allocation6 + $0x208] ss:$16 sps:$4 sm:$0xff]  }
  0xf8   : > { %v5407_v8 = vld [vmem:[#allocation6 + $0x224] ss:$16 sps:$4 sm:$0xff]   ;;  %v5410_v9 = vld [vmem:[#allocation6 + $0x22c] ss:$16 sps:$4 sm:$0xff]   ;;  %v5405_v10 = vld [vmem:[#allocation6 + $0x220] ss:$16 sps:$4 sm:$0xff]  }
  0xf9   : > { %v5408_v11 = vld [vmem:[#allocation6 + $0x228] ss:$16 sps:$4 sm:$0xff]   ;;  %v5413_v12 = vld [vmem:[#allocation6 + $0x244] ss:$16 sps:$4 sm:$0xff]   ;;  %v5416_v13 = vld [vmem:[#allocation6 + $0x24c] ss:$16 sps:$4 sm:$0xff]  }
  0xfa   : > { %1227 = vmatpush1.bf16.msra.mxu0 %v5343_v26  ;;  %1309 = vmatpush1.bf16.msra.mxu1 %v5344_v27  ;;  %v5411_v14 = vld [vmem:[#allocation6 + $0x240] ss:$16 sps:$4 sm:$0xff]   ;;  %v5414_v15 = vld [vmem:[#allocation6 + $0x248] ss:$16 sps:$4 sm:$0xff]   ;;  %v5419_v16 = vld [vmem:[#allocation6 + $0x264] ss:$16 sps:$4 sm:$0xff]  }
  0xfb   : > { %1228 = vmatprep.subr.bf16.mxu0 %v5345_v28  ;;  %1310 = vmatprep.subr.bf16.mxu1 %v5347_v29  ;;  %v5422_v17 = vld [vmem:[#allocation6 + $0x26c] ss:$16 sps:$4 sm:$0xff]   ;;  %v5417_v18 = vld [vmem:[#allocation6 + $0x260] ss:$16 sps:$4 sm:$0xff]   ;;  %v5420_v19 = vld [vmem:[#allocation6 + $0x268] ss:$16 sps:$4 sm:$0xff]  }
  0xfc   : > { %v5425_v20 = vld [vmem:[#allocation6 + $0x284] ss:$16 sps:$4 sm:$0xff]   ;;  %v5428_v21 = vld [vmem:[#allocation6 + $0x28c] ss:$16 sps:$4 sm:$0xff]   ;;  %v5423_v22 = vld [vmem:[#allocation6 + $0x280] ss:$16 sps:$4 sm:$0xff]  }
  0xfd   : > { %v5426_v23 = vld [vmem:[#allocation6 + $0x288] ss:$16 sps:$4 sm:$0xff]   ;;  %v5431_v24 = vld [vmem:[#allocation6 + $0x2a4] ss:$16 sps:$4 sm:$0xff]   ;;  %v5434_v25 = vld [vmem:[#allocation6 + $0x2ac] ss:$16 sps:$4 sm:$0xff]  }
  0xfe   : > { %1229 = vmatpush1.bf16.msra.mxu0 %v5349_v30  ;;  %1311 = vmatpush1.bf16.msra.mxu1 %v5350_v31  ;;  %v5429_v26 = vld [vmem:[#allocation6 + $0x2a0] ss:$16 sps:$4 sm:$0xff]   ;;  %v5432_v27 = vld [vmem:[#allocation6 + $0x2a8] ss:$16 sps:$4 sm:$0xff]   ;;  %v5437_v28 = vld [vmem:[#allocation6 + $0x2c4] ss:$16 sps:$4 sm:$0xff]  }
  0xff   : > { %1230 = vmatprep.subr.bf16.mxu0 %v5351_v32  ;;  %1312 = vmatprep.subr.bf16.mxu1 %v5353_v33  ;;  %v5440_v29 = vld [vmem:[#allocation6 + $0x2cc] ss:$16 sps:$4 sm:$0xff]   ;;  %v5435_v32 = vld [vmem:[#allocation6 + $0x2c0] ss:$16 sps:$4 sm:$0xff]   ;;  %v5438_v33 = vld [vmem:[#allocation6 + $0x2c8] ss:$16 sps:$4 sm:$0xff]  }
 0x100   : > { %v419_v30 = vld [vmem:[#allocation3 + $0x18] sm:$0xff]  ;;  %v5461_v46 = vld [vmem:[#allocation6 + $0x344] ss:$16 sps:$4 sm:$0xff]   ;;  %v5459_v48 = vld [vmem:[#allocation6 + $0x340] ss:$16 sps:$4 sm:$0xff]  }
 0x101   : > { %v423_v31 = vpack.c.bf16 %v419_v30, %v419_v30  ;;  %v5491_v2 = vld [vmem:[#allocation6 + $0x3e4] ss:$16 sps:$4 sm:$0xff]  }
 0x102   : > { %1231 = vmatpush1.bf16.msra.mxu0 %v5355_v34  ;;  %1313 = vmatpush1.bf16.msra.mxu1 %v5356_v35  ;;  %v5443_v34 = vld [vmem:[#allocation6 + $0x2e4] ss:$16 sps:$4 sm:$0xff]   ;;  %v5446_v35 = vld [vmem:[#allocation6 + $0x2ec] ss:$16 sps:$4 sm:$0xff]  }
 0x103   : > { %1232 = vmatprep.subr.bf16.mxu0 %v5357_v36  ;;  %1314 = vmatprep.subr.bf16.mxu1 %v5359_v37  ;;  %v5441_v36 = vld [vmem:[#allocation6 + $0x2e0] ss:$16 sps:$4 sm:$0xff]   ;;  %v5444_v37 = vld [vmem:[#allocation6 + $0x2e8] ss:$16 sps:$4 sm:$0xff]  }
 0x106   : > { %1233 = vmatpush1.bf16.msra.mxu0 %v5361_v38  ;;  %1315 = vmatpush1.bf16.msra.mxu1 %v5362_v39  ;;  %v5449_v38 = vld [vmem:[#allocation6 + $0x304] ss:$16 sps:$4 sm:$0xff]   ;;  %v5452_v39 = vld [vmem:[#allocation6 + $0x30c] ss:$16 sps:$4 sm:$0xff]  }
 0x107   : > { %1234 = vmatprep.subr.bf16.mxu0 %v5363_v40  ;;  %1316 = vmatprep.subr.bf16.mxu1 %v5365_v41  ;;  %v5447_v40 = vld [vmem:[#allocation6 + $0x300] ss:$16 sps:$4 sm:$0xff]   ;;  %v5450_v41 = vld [vmem:[#allocation6 + $0x308] ss:$16 sps:$4 sm:$0xff]  }
 0x10a   : > { %1235 = vmatpush1.bf16.msra.mxu0 %v5367_v42  ;;  %1317 = vmatpush1.bf16.msra.mxu1 %v5368_v43  ;;  %v5455_v42 = vld [vmem:[#allocation6 + $0x324] ss:$16 sps:$4 sm:$0xff]   ;;  %v5458_v43 = vld [vmem:[#allocation6 + $0x32c] ss:$16 sps:$4 sm:$0xff]  }
 0x10b   : > { %1236 = vmatprep.subr.bf16.mxu0 %v5369_v44  ;;  %1318 = vmatprep.subr.bf16.mxu1 %v5371_v45  ;;  %v5453_v44 = vld [vmem:[#allocation6 + $0x320] ss:$16 sps:$4 sm:$0xff]   ;;  %v5456_v45 = vld [vmem:[#allocation6 + $0x328] ss:$16 sps:$4 sm:$0xff]  }
 0x10e   : > { %1237 = vmatpush1.bf16.msra.mxu0 %v5373_v47  ;;  %1319 = vmatpush1.bf16.msra.mxu1 %v5374_v49  ;;  %v5464_v47 = vld [vmem:[#allocation6 + $0x34c] ss:$16 sps:$4 sm:$0xff]   ;;  %v5462_v49 = vld [vmem:[#allocation6 + $0x348] ss:$16 sps:$4 sm:$0xff]  }
 0x10f   : > { %1238 = vmatprep.subr.bf16.mxu0 %v5375_v50  ;;  %1320 = vmatprep.subr.bf16.mxu1 %v5377_v51  ;;  %v5467_v50 = vld [vmem:[#allocation6 + $0x364] ss:$16 sps:$4 sm:$0xff]   ;;  %v5470_v51 = vld [vmem:[#allocation6 + $0x36c] ss:$16 sps:$4 sm:$0xff]  }
 0x112   : > { %1239 = vmatpush1.bf16.msra.mxu0 %v5379_v52  ;;  %1321 = vmatpush1.bf16.msra.mxu1 %v5380_v53  ;;  %v5465_v52 = vld [vmem:[#allocation6 + $0x360] ss:$16 sps:$4 sm:$0xff]   ;;  %v5468_v53 = vld [vmem:[#allocation6 + $0x368] ss:$16 sps:$4 sm:$0xff]  }
 0x113   : > { %1240 = vmatprep.subr.bf16.mxu0 %v5381_v54  ;;  %1322 = vmatprep.subr.bf16.mxu1 %v5383_v55  ;;  %v5473_v54 = vld [vmem:[#allocation6 + $0x384] ss:$16 sps:$4 sm:$0xff]   ;;  %v5476_v55 = vld [vmem:[#allocation6 + $0x38c] ss:$16 sps:$4 sm:$0xff]  }
 0x116   : > { %1241 = vmatpush1.bf16.msra.mxu0 %v5385_v56  ;;  %1323 = vmatpush1.bf16.msra.mxu1 %v5386_v57  ;;  %v5471_v56 = vld [vmem:[#allocation6 + $0x380] ss:$16 sps:$4 sm:$0xff]   ;;  %v5474_v57 = vld [vmem:[#allocation6 + $0x388] ss:$16 sps:$4 sm:$0xff]  }
 0x117   : > { %1242 = vmatprep.subr.bf16.mxu0 %v5387_v58  ;;  %1324 = vmatprep.subr.bf16.mxu1 %v5389_v59  ;;  %v5479_v58 = vld [vmem:[#allocation6 + $0x3a4] ss:$16 sps:$4 sm:$0xff]   ;;  %v5482_v59 = vld [vmem:[#allocation6 + $0x3ac] ss:$16 sps:$4 sm:$0xff]  }
 0x11a   : > { %1243 = vmatpush1.bf16.msra.mxu0 %v5391_v60  ;;  %1325 = vmatpush1.bf16.msra.mxu1 %v5392_v61  ;;  %v5477_v60 = vld [vmem:[#allocation6 + $0x3a0] ss:$16 sps:$4 sm:$0xff]   ;;  %v5480_v61 = vld [vmem:[#allocation6 + $0x3a8] ss:$16 sps:$4 sm:$0xff]  }
 0x11b   : > { %1244 = vmatprep.subr.bf16.mxu0 %v5393_v62  ;;  %1326 = vmatprep.subr.bf16.mxu1 %v5395_v63  ;;  %v5485_v62 = vld [vmem:[#allocation6 + $0x3c4] ss:$16 sps:$4 sm:$0xff]   ;;  %v5488_v63 = vld [vmem:[#allocation6 + $0x3cc] ss:$16 sps:$4 sm:$0xff]  }
 0x11e   : > { %1245 = vmatpush1.bf16.msra.mxu0 %v5397_v0  ;;  %1327 = vmatpush1.bf16.msra.mxu1 %v5398_v1  ;;  %v5483_v0 = vld [vmem:[#allocation6 + $0x3c0] ss:$16 sps:$4 sm:$0xff]   ;;  %v5486_v1 = vld [vmem:[#allocation6 + $0x3c8] ss:$16 sps:$4 sm:$0xff]  }
 0x11f   : > { %1255 = vmatprep.subr.bf16.mxu0 %v5401_v3  ;;  %1337 = vmatprep.subr.bf16.mxu1 %v5404_v4  ;;  %v5494_v3 = vld [vmem:[#allocation6 + $0x3ec] ss:$16 sps:$4 sm:$0xff]   ;;  %v5489_v4 = vld [vmem:[#allocation6 + $0x3e0] ss:$16 sps:$4 sm:$0xff]  }
 0x121   : > { %1247 = vmatmul.mubr.bf16.vlgmr.msra.gmra.mrb[0].mxu0 %v420_v5  ;;  %1329 = vmatmul.mubr.bf16.vlgmr.msra.gmra.mrb[0].mxu1 %v420_v5  ;;  %v5492_v5 = vld [vmem:[#allocation6 + $0x3e8] ss:$16 sps:$4 sm:$0xff]  }
 0x122   : > { %1256 = vmatpush1.bf16.msra.mxu0 %v5399_v6  ;;  %1338 = vmatpush1.bf16.msra.mxu1 %v5402_v7  ;;  %v418_v6 = vld [vmem:[#allocation3 + $0x10] sm:$0xff] }
 0x123   : > { %1257 = vmatprep.subr.bf16.mxu0 %v5407_v8  ;;  %1339 = vmatprep.subr.bf16.mxu1 %v5410_v9  ;;  %v422_v7 = vpack.c.bf16 %v418_v6, %v418_v6  ;;  %v554_v8 = vlaneseq }
 0x124   : > { %1287 = vmatprep.mubr.bf16.mxu0 %v423_v31  ;;  %1369 = vmatprep.mubr.bf16.mxu1 %v423_v31 }
 0x125   : > { %v555_v9 = vshrl.u32 %v554_v8, 7 }
 0x126   : > { %1258 = vmatpush1.bf16.msra.mxu0 %v5405_v10  ;;  %1340 = vmatpush1.bf16.msra.mxu1 %v5408_v11 }
 0x127   : > { %1259 = vmatprep.subr.bf16.mxu0 %v5413_v12  ;;  %1341 = vmatprep.subr.bf16.mxu1 %v5416_v13  ;;  %v556_v10 = vsub.s32 0, %v555_v9  ;;  %v564_v11 = vsub.s32 2, %v555_v9  ;;  %v552_v12 = vld [vmem:[#allocation8] sm:$0xf]  ;;  %v560_v13 = vsub.s32 1, %v555_v9 }
 0x12a   : > { %1260 = vmatpush1.bf16.msra.mxu0 %v5411_v14  ;;  %1342 = vmatpush1.bf16.msra.mxu1 %v5414_v15  ;;  %v568_v14 = vsub.s32 3, %v555_v9  ;;  %v557_v15 = vrot.slane %v552_v12, %v556_v10 }
 0x12b   : > { %1261 = vmatprep.subr.bf16.mxu0 %v5419_v16  ;;  %1343 = vmatprep.subr.bf16.mxu1 %v5422_v17  ;;  %v565_v16 = vrot.slane %v552_v12, %v564_v11  ;;  %v561_v17 = vrot.slane %v552_v12, %v560_v13 }
 0x12e   : > { %1262 = vmatpush1.bf16.msra.mxu0 %v5417_v18  ;;  %1344 = vmatpush1.bf16.msra.mxu1 %v5420_v19  ;;  %v569_v18 = vrot.slane %v552_v12, %v568_v14 }
 0x12f   : > { %1263 = vmatprep.subr.bf16.mxu0 %v5425_v20  ;;  %1345 = vmatprep.subr.bf16.mxu1 %v5428_v21 }
 0x132   : > { %1264 = vmatpush1.bf16.msra.mxu0 %v5423_v22  ;;  %1346 = vmatpush1.bf16.msra.mxu1 %v5426_v23 }
 0x133   : > { %1265 = vmatprep.subr.bf16.mxu0 %v5431_v24  ;;  %1347 = vmatprep.subr.bf16.mxu1 %v5434_v25 }
 0x136   : > { %1266 = vmatpush1.bf16.msra.mxu0 %v5429_v26  ;;  %1348 = vmatpush1.bf16.msra.mxu1 %v5432_v27 }
 0x137   : > { %1267 = vmatprep.subr.bf16.mxu0 %v5437_v28  ;;  %1349 = vmatprep.subr.bf16.mxu1 %v5440_v29 }
 0x13a   : > { %1268 = vmatpush1.bf16.msra.mxu0 %v5435_v32  ;;  %1350 = vmatpush1.bf16.msra.mxu1 %v5438_v33 }
 0x13b   : > { %1269 = vmatprep.subr.bf16.mxu0 %v5443_v34  ;;  %1351 = vmatprep.subr.bf16.mxu1 %v5446_v35 }
 0x13e   : > { %1270 = vmatpush1.bf16.msra.mxu0 %v5441_v36  ;;  %1352 = vmatpush1.bf16.msra.mxu1 %v5444_v37 }
 0x13f   : > { %1271 = vmatprep.subr.bf16.mxu0 %v5449_v38  ;;  %1353 = vmatprep.subr.bf16.mxu1 %v5452_v39 }
 0x142   : > { %1272 = vmatpush1.bf16.msra.mxu0 %v5447_v40  ;;  %1354 = vmatpush1.bf16.msra.mxu1 %v5450_v41 }
 0x143   : > { %1273 = vmatprep.subr.bf16.mxu0 %v5455_v42  ;;  %1355 = vmatprep.subr.bf16.mxu1 %v5458_v43 }
 0x146   : > { %1274 = vmatpush1.bf16.msra.mxu0 %v5453_v44  ;;  %1356 = vmatpush1.bf16.msra.mxu1 %v5456_v45 }
 0x147   : > { %1275 = vmatprep.subr.bf16.mxu0 %v5461_v46  ;;  %1357 = vmatprep.subr.bf16.mxu1 %v5464_v47 }
 0x14a   : > { %1276 = vmatpush1.bf16.msra.mxu0 %v5459_v48  ;;  %1358 = vmatpush1.bf16.msra.mxu1 %v5462_v49 }
 0x14b   : > { %1277 = vmatprep.subr.bf16.mxu0 %v5467_v50  ;;  %1359 = vmatprep.subr.bf16.mxu1 %v5470_v51 }
 0x14e   : > { %1278 = vmatpush1.bf16.msra.mxu0 %v5465_v52  ;;  %1360 = vmatpush1.bf16.msra.mxu1 %v5468_v53 }
 0x14f   : > { %1279 = vmatprep.subr.bf16.mxu0 %v5473_v54  ;;  %1361 = vmatprep.subr.bf16.mxu1 %v5476_v55 }
 0x152   : > { %1280 = vmatpush1.bf16.msra.mxu0 %v5471_v56  ;;  %1362 = vmatpush1.bf16.msra.mxu1 %v5474_v57 }
 0x153   : > { %1281 = vmatprep.subr.bf16.mxu0 %v5479_v58  ;;  %1363 = vmatprep.subr.bf16.mxu1 %v5482_v59 }
 0x156   : > { %1282 = vmatpush1.bf16.msra.mxu0 %v5477_v60  ;;  %1364 = vmatpush1.bf16.msra.mxu1 %v5480_v61 }
 0x157   : > { %1283 = vmatprep.subr.bf16.mxu0 %v5485_v62  ;;  %1365 = vmatprep.subr.bf16.mxu1 %v5488_v63 }
 0x15a   : > { %1284 = vmatpush1.bf16.msra.mxu0 %v5483_v0  ;;  %1366 = vmatpush1.bf16.msra.mxu1 %v5486_v1 }
 0x15b   : > { %1285 = vmatprep.subr.bf16.mxu0 %v5491_v2  ;;  %1367 = vmatprep.subr.bf16.mxu1 %v5494_v3 }
 0x15e   : > { %1286 = vmatpush1.bf16.msra.mxu0 %v5489_v4  ;;  %1368 = vmatpush1.bf16.msra.mxu1 %v5492_v5 }
 0x161   : > { %1288 = vmatmul.mubr.bf16.vlgmr.msra.gmra.mrb[0].mxu0 %v422_v7  ;;  %1370 = vmatmul.mubr.bf16.vlgmr.msra.gmra.mrb[0].mxu1 %v422_v7 }
 0x234   : > { %v1289_v19 = vpop.f32.mrb[0].mxu0  ;;  %v1371_v20 = vpop.f32.mrb[0].mxu1 }
 0x235   : > { %v5147_v21 = vadd.f32 %v1289_v19, %v557_v15  ;;  %v5149_v22 = vadd.f32 %v1371_v20, %v565_v16  ;;  %v1291_v23 = vpop.f32.mrb[1].mxu0  ;;  %v1373_v24 = vpop.f32.mrb[1].mxu1 }
 0x236   : > { %v5148_v25 = vadd.f32 %v1291_v23, %v561_v17  ;;  %v5150_v26 = vadd.f32 %v1373_v24, %v569_v18  ;;  %v1293_v27 = vpop.f32.mrb[2].mxu0  ;;  %v1375_v28 = vpop.f32.mrb[2].mxu1 }
 0x237   : > { %v1378_v29 = vmax.f32 %v5147_v21, 0.0  ;;  %v1380_v30 = vmax.f32 %v5149_v22, 0.0  ;;  %v1294_v31 = vpop.f32.mrb[3].mxu0  ;;  %v1376_v32 = vpop.f32.mrb[3].mxu1 }
 0x238   : > { %v1379_v33 = vmax.f32 %v5148_v25, 0.0  ;;  %v1381_v34 = vmax.f32 %v5150_v26, 0.0 }
 0x239   : > { %1382 = vst [vmem:[#allocation2] sm:$0xff] %v1378_v29  ;;  %1384 = vst [vmem:[#allocation2 + $0x10] sm:$0xff] %v1380_v30 }
 0x23a   : > { %1383 = vst [vmem:[#allocation2 + $0x8] sm:$0xff] %v1379_v33  ;;  %1385 = vst [vmem:[#allocation2 + $0x18] sm:$0xff] %v1381_v34 }
 0x23b PF: > { %v5495_v35 = vld [vmem:[%s6705_s15 + $0x4] ss:$16 sps:$4 sm:$0xff]   ;;  %v5497_v36 = vld [vmem:[%s6705_s15 + $0xc] ss:$16 sps:$4 sm:$0xff]   ;;  %v5499_v37 = vld [vmem:[%s6705_s15] ss:$16 sps:$4 sm:$0xff]  }
 0x23c   : > { %2200 = vmatprep.subr.bf16.mxu0 %v5495_v35  ;;  %v5500_v38 = vld [vmem:[%s6705_s15 + $0x8] ss:$16 sps:$4 sm:$0xff]   ;;  %2282 = vmatprep.subr.bf16.mxu1 %v5497_v36  ;;  %v5501_v39 = vld [vmem:[%s6705_s15 + $0x24] ss:$16 sps:$4 sm:$0xff]   ;;  %v5503_v40 = vld [vmem:[%s6705_s15 + $0x2c] ss:$16 sps:$4 sm:$0xff]  }
 0x23d   : > { %2201 = vmatpush1.bf16.msra.mxu0 %v5499_v37  ;;  %2283 = vmatpush1.bf16.msra.mxu1 %v5500_v38  ;;  %v5505_v41 = vld [vmem:[%s6705_s15 + $0x20] ss:$16 sps:$4 sm:$0xff]   ;;  %v5506_v42 = vld [vmem:[%s6705_s15 + $0x28] ss:$16 sps:$4 sm:$0xff]   ;;  %v5507_v43 = vld [vmem:[%s6705_s15 + $0x44] ss:$16 sps:$4 sm:$0xff]  }
 0x23e   : > { %2202 = vmatprep.subr.bf16.mxu0 %v5501_v39  ;;  %2284 = vmatprep.subr.bf16.mxu1 %v5503_v40  ;;  %v5509_v44 = vld [vmem:[%s6705_s15 + $0x4c] ss:$16 sps:$4 sm:$0xff]   ;;  %v5511_v45 = vld [vmem:[%s6705_s15 + $0x40] ss:$16 sps:$4 sm:$0xff]   ;;  %v5512_v46 = vld [vmem:[%s6705_s15 + $0x48] ss:$16 sps:$4 sm:$0xff]  }
 0x23f   : > { %v5513_v47 = vld [vmem:[%s6705_s15 + $0x64] ss:$16 sps:$4 sm:$0xff]   ;;  %v5515_v48 = vld [vmem:[%s6705_s15 + $0x6c] ss:$16 sps:$4 sm:$0xff]   ;;  %v5517_v49 = vld [vmem:[%s6705_s15 + $0x60] ss:$16 sps:$4 sm:$0xff]  }
 0x240   : > { %v5518_v50 = vld [vmem:[%s6705_s15 + $0x68] ss:$16 sps:$4 sm:$0xff]   ;;  %v5519_v51 = vld [vmem:[%s6705_s15 + $0x84] ss:$16 sps:$4 sm:$0xff]   ;;  %v5521_v52 = vld [vmem:[%s6705_s15 + $0x8c] ss:$16 sps:$4 sm:$0xff]  }
 0x241   : > { %2203 = vmatpush1.bf16.msra.mxu0 %v5505_v41  ;;  %2285 = vmatpush1.bf16.msra.mxu1 %v5506_v42  ;;  %v5523_v53 = vld [vmem:[%s6705_s15 + $0x80] ss:$16 sps:$4 sm:$0xff]   ;;  %v5524_v54 = vld [vmem:[%s6705_s15 + $0x88] ss:$16 sps:$4 sm:$0xff]   ;;  %v5525_v55 = vld [vmem:[%s6705_s15 + $0xa4] ss:$16 sps:$4 sm:$0xff]  }
 0x242   : > { %2204 = vmatprep.subr.bf16.mxu0 %v5507_v43  ;;  %2286 = vmatprep.subr.bf16.mxu1 %v5509_v44  ;;  %v5527_v56 = vld [vmem:[%s6705_s15 + $0xac] ss:$16 sps:$4 sm:$0xff]   ;;  %v5529_v57 = vld [vmem:[%s6705_s15 + $0xa0] ss:$16 sps:$4 sm:$0xff]   ;;  %v5530_v58 = vld [vmem:[%s6705_s15 + $0xa8] ss:$16 sps:$4 sm:$0xff]  }
 0x243   : > { %v5531_v59 = vld [vmem:[%s6705_s15 + $0xc4] ss:$16 sps:$4 sm:$0xff]   ;;  %v5533_v60 = vld [vmem:[%s6705_s15 + $0xcc] ss:$16 sps:$4 sm:$0xff]   ;;  %v5535_v61 = vld [vmem:[%s6705_s15 + $0xc0] ss:$16 sps:$4 sm:$0xff]  }
 0x244   : > { %v5536_v62 = vld [vmem:[%s6705_s15 + $0xc8] ss:$16 sps:$4 sm:$0xff]   ;;  %v5537_v63 = vld [vmem:[%s6705_s15 + $0xe4] ss:$16 sps:$4 sm:$0xff]   ;;  %v5539_v0 = vld [vmem:[%s6705_s15 + $0xec] ss:$16 sps:$4 sm:$0xff]  }
 0x245   : > { %2205 = vmatpush1.bf16.msra.mxu0 %v5511_v45  ;;  %2287 = vmatpush1.bf16.msra.mxu1 %v5512_v46  ;;  %v5541_v1 = vld [vmem:[%s6705_s15 + $0xe0] ss:$16 sps:$4 sm:$0xff]   ;;  %v5542_v2 = vld [vmem:[%s6705_s15 + $0xe8] ss:$16 sps:$4 sm:$0xff]   ;;  %v5543_v3 = vld [vmem:[%s6705_s15 + $0x104] ss:$16 sps:$4 sm:$0xff]  }
 0x246   : > { %2206 = vmatprep.subr.bf16.mxu0 %v5513_v47  ;;  %2288 = vmatprep.subr.bf16.mxu1 %v5515_v48  ;;  %v5545_v4 = vld [vmem:[%s6705_s15 + $0x10c] ss:$16 sps:$4 sm:$0xff]   ;;  %v5547_v5 = vld [vmem:[%s6705_s15 + $0x100] ss:$16 sps:$4 sm:$0xff]   ;;  %v5548_v6 = vld [vmem:[%s6705_s15 + $0x108] ss:$16 sps:$4 sm:$0xff]  }
 0x247   : > { %v5549_v7 = vld [vmem:[%s6705_s15 + $0x124] ss:$16 sps:$4 sm:$0xff]   ;;  %v5551_v8 = vld [vmem:[%s6705_s15 + $0x12c] ss:$16 sps:$4 sm:$0xff]   ;;  %v5553_v9 = vld [vmem:[%s6705_s15 + $0x120] ss:$16 sps:$4 sm:$0xff]  }
 0x248   : > { %v5554_v10 = vld [vmem:[%s6705_s15 + $0x128] ss:$16 sps:$4 sm:$0xff]   ;;  %v5555_v11 = vld [vmem:[%s6705_s15 + $0x144] ss:$16 sps:$4 sm:$0xff]   ;;  %v5557_v12 = vld [vmem:[%s6705_s15 + $0x14c] ss:$16 sps:$4 sm:$0xff]  }
 0x249   : > { %2207 = vmatpush1.bf16.msra.mxu0 %v5517_v49  ;;  %2289 = vmatpush1.bf16.msra.mxu1 %v5518_v50  ;;  %v5559_v13 = vld [vmem:[%s6705_s15 + $0x140] ss:$16 sps:$4 sm:$0xff]   ;;  %v5560_v14 = vld [vmem:[%s6705_s15 + $0x148] ss:$16 sps:$4 sm:$0xff]   ;;  %v5561_v15 = vld [vmem:[%s6705_s15 + $0x164] ss:$16 sps:$4 sm:$0xff]  }
 0x24a   : > { %2208 = vmatprep.subr.bf16.mxu0 %v5519_v51  ;;  %2290 = vmatprep.subr.bf16.mxu1 %v5521_v52  ;;  %v5563_v16 = vld [vmem:[%s6705_s15 + $0x16c] ss:$16 sps:$4 sm:$0xff]   ;;  %v1387_v17 = vld [vmem:[#allocation2 + $0x8] sm:$0xff]  ;;  %v5565_v18 = vld [vmem:[%s6705_s15 + $0x160] ss:$16 sps:$4 sm:$0xff]   ;;  %p5012_p7 = scmp.ne.s32.totalorder %s6360_s27, 4 }
 0x24b   : > { %v1392_v19 = vpack.c.bf16 %v1387_v17, %v1387_v17  ;;  %v5566_v20 = vld [vmem:[%s6705_s15 + $0x168] ss:$16 sps:$4 sm:$0xff]   ;;  %v5567_v21 = vld [vmem:[%s6705_s15 + $0x184] ss:$16 sps:$4 sm:$0xff]   ;;  %v5569_v22 = vld [vmem:[%s6705_s15 + $0x18c] ss:$16 sps:$4 sm:$0xff]  }
 0x24c   : > { %v5571_v23 = vld [vmem:[%s6705_s15 + $0x180] ss:$16 sps:$4 sm:$0xff]   ;;  %v5572_v24 = vld [vmem:[%s6705_s15 + $0x188] ss:$16 sps:$4 sm:$0xff]   ;;  %v5573_v25 = vld [vmem:[%s6705_s15 + $0x1a4] ss:$16 sps:$4 sm:$0xff]  }
 0x24d   : > { %2209 = vmatpush1.bf16.msra.mxu0 %v5523_v53  ;;  %2291 = vmatpush1.bf16.msra.mxu1 %v5524_v54  ;;  %v5575_v26 = vld [vmem:[%s6705_s15 + $0x1ac] ss:$16 sps:$4 sm:$0xff]   ;;  %v5577_v27 = vld [vmem:[%s6705_s15 + $0x1a0] ss:$16 sps:$4 sm:$0xff]   ;;  %v5578_v28 = vld [vmem:[%s6705_s15 + $0x1a8] ss:$16 sps:$4 sm:$0xff]  }
 0x24e   : > { %2210 = vmatprep.subr.bf16.mxu0 %v5525_v55  ;;  %2292 = vmatprep.subr.bf16.mxu1 %v5527_v56  ;;  %v5579_v29 = vld [vmem:[%s6705_s15 + $0x1c4] ss:$16 sps:$4 sm:$0xff]   ;;  %v5581_v30 = vld [vmem:[%s6705_s15 + $0x1cc] ss:$16 sps:$4 sm:$0xff]   ;;  %v5583_v31 = vld [vmem:[%s6705_s15 + $0x1c0] ss:$16 sps:$4 sm:$0xff]  }
 0x24f   : > { %2232 = vmatprep.mubr.bf16.mxu0 %v1392_v19  ;;  %2314 = vmatprep.mubr.bf16.mxu1 %v1392_v19  ;;  %v5584_v32 = vld [vmem:[%s6705_s15 + $0x1c8] ss:$16 sps:$4 sm:$0xff]   ;;  %v5585_v33 = vld [vmem:[%s6705_s15 + $0x1e4] ss:$16 sps:$4 sm:$0xff]   ;;  %v5587_v34 = vld [vmem:[%s6705_s15 + $0x1ec] ss:$16 sps:$4 sm:$0xff]  }
 0x250   : > { %v5589_v35 = vld [vmem:[%s6705_s15 + $0x1e0] ss:$16 sps:$4 sm:$0xff]   ;;  %v5590_v36 = vld [vmem:[%s6705_s15 + $0x1e8] ss:$16 sps:$4 sm:$0xff]   ;;  %v5593_v38 = vld [vmem:[%s6705_s15 + $0x204] ss:$16 sps:$4 sm:$0xff]  }
 0x251   : > { %2211 = vmatpush1.bf16.msra.mxu0 %v5529_v57  ;;  %2293 = vmatpush1.bf16.msra.mxu1 %v5530_v58  ;;  %v1386_v37 = vld [vmem:[#allocation2] sm:$0xff]  ;;  %v5594_v42 = vld [vmem:[%s6705_s15 + $0x208] ss:$16 sps:$4 sm:$0xff]   ;;  %v5599_v43 = vld [vmem:[%s6705_s15 + $0x224] ss:$16 sps:$4 sm:$0xff]  }
 0x252   : > { %2212 = vmatprep.subr.bf16.mxu0 %v5531_v59  ;;  %2294 = vmatprep.subr.bf16.mxu1 %v5533_v60  ;;  %v5596_v39 = vld [vmem:[%s6705_s15 + $0x20c] ss:$16 sps:$4 sm:$0xff]   ;;  %v1391_v40 = vpack.c.bf16 %v1386_v37, %v1386_v37  ;;  %v5591_v41 = vld [vmem:[%s6705_s15 + $0x200] ss:$16 sps:$4 sm:$0xff]   ;;  %v5600_v46 = vld [vmem:[%s6705_s15 + $0x228] ss:$16 sps:$4 sm:$0xff]  }
 0x253   : > { %v5602_v44 = vld [vmem:[%s6705_s15 + $0x22c] ss:$16 sps:$4 sm:$0xff]   ;;  %v5597_v45 = vld [vmem:[%s6705_s15 + $0x220] ss:$16 sps:$4 sm:$0xff]   ;;  %v5605_v47 = vld [vmem:[%s6705_s15 + $0x244] ss:$16 sps:$4 sm:$0xff]  }
 0x254   : > { %v5608_v48 = vld [vmem:[%s6705_s15 + $0x24c] ss:$16 sps:$4 sm:$0xff]   ;;  %v5603_v49 = vld [vmem:[%s6705_s15 + $0x240] ss:$16 sps:$4 sm:$0xff]   ;;  %v5606_v50 = vld [vmem:[%s6705_s15 + $0x248] ss:$16 sps:$4 sm:$0xff]  }
 0x255   : > { %2213 = vmatpush1.bf16.msra.mxu0 %v5535_v61  ;;  %2295 = vmatpush1.bf16.msra.mxu1 %v5536_v62  ;;  %v5611_v51 = vld [vmem:[%s6705_s15 + $0x264] ss:$16 sps:$4 sm:$0xff]   ;;  %v5614_v52 = vld [vmem:[%s6705_s15 + $0x26c] ss:$16 sps:$4 sm:$0xff]   ;;  %v5609_v53 = vld [vmem:[%s6705_s15 + $0x260] ss:$16 sps:$4 sm:$0xff]  }
 0x256   : > { %2214 = vmatprep.subr.bf16.mxu0 %v5537_v63  ;;  %2296 = vmatprep.subr.bf16.mxu1 %v5539_v0  ;;  %v5612_v54 = vld [vmem:[%s6705_s15 + $0x268] ss:$16 sps:$4 sm:$0xff]   ;;  %v5617_v55 = vld [vmem:[%s6705_s15 + $0x284] ss:$16 sps:$4 sm:$0xff]   ;;  %v5620_v56 = vld [vmem:[%s6705_s15 + $0x28c] ss:$16 sps:$4 sm:$0xff]  }
 0x257   : > { %v5615_v57 = vld [vmem:[%s6705_s15 + $0x280] ss:$16 sps:$4 sm:$0xff]   ;;  %v5618_v58 = vld [vmem:[%s6705_s15 + $0x288] ss:$16 sps:$4 sm:$0xff]   ;;  %v5623_v59 = vld [vmem:[%s6705_s15 + $0x2a4] ss:$16 sps:$4 sm:$0xff]  }
 0x258   : > { %v5626_v60 = vld [vmem:[%s6705_s15 + $0x2ac] ss:$16 sps:$4 sm:$0xff]   ;;  %v5621_v61 = vld [vmem:[%s6705_s15 + $0x2a0] ss:$16 sps:$4 sm:$0xff]   ;;  %v5624_v62 = vld [vmem:[%s6705_s15 + $0x2a8] ss:$16 sps:$4 sm:$0xff]  }
 0x259   : > { %2215 = vmatpush1.bf16.msra.mxu0 %v5541_v1  ;;  %2297 = vmatpush1.bf16.msra.mxu1 %v5542_v2  ;;  %v5629_v63 = vld [vmem:[%s6705_s15 + $0x2c4] ss:$16 sps:$4 sm:$0xff]   ;;  %v5632_v0 = vld [vmem:[%s6705_s15 + $0x2cc] ss:$16 sps:$4 sm:$0xff]   ;;  %v5627_v2 = vld [vmem:[%s6705_s15 + $0x2c0] ss:$16 sps:$4 sm:$0xff]  }
 0x25a   : > { %2216 = vmatprep.subr.bf16.mxu0 %v5543_v3  ;;  %2298 = vmatprep.subr.bf16.mxu1 %v5545_v4  ;;  %v1389_v1 = vld [vmem:[#allocation2 + $0x18] sm:$0xff]  ;;  %v5651_v19 = vld [vmem:[%s6705_s15 + $0x340] ss:$16 sps:$4 sm:$0xff]  }
 0x25b   : > { %v5630_v3 = vld [vmem:[%s6705_s15 + $0x2c8] ss:$16 sps:$4 sm:$0xff]   ;;  %v1394_v4 = vpack.c.bf16 %v1389_v1, %v1389_v1  ;;  %v5653_v17 = vld [vmem:[%s6705_s15 + $0x344] ss:$16 sps:$4 sm:$0xff]   ;;  %v5717_v1 = vld [vmem:[%s6705_s15 + $0x4a0] ss:$16 sps:$4 sm:$0xff]  }
 0x25c   : > { %v5683_v37 = vld [vmem:[%s6705_s15 + $0x3e4] ss:$16 sps:$4 sm:$0xff]  }
 0x25d   : > { %2217 = vmatpush1.bf16.msra.mxu0 %v5547_v5  ;;  %2299 = vmatpush1.bf16.msra.mxu1 %v5548_v6  ;;  %v5635_v5 = vld [vmem:[%s6705_s15 + $0x2e4] ss:$16 sps:$4 sm:$0xff]   ;;  %v5638_v6 = vld [vmem:[%s6705_s15 + $0x2ec] ss:$16 sps:$4 sm:$0xff]  }
 0x25e   : > { %2218 = vmatprep.subr.bf16.mxu0 %v5549_v7  ;;  %2300 = vmatprep.subr.bf16.mxu1 %v5551_v8  ;;  %v5633_v7 = vld [vmem:[%s6705_s15 + $0x2e0] ss:$16 sps:$4 sm:$0xff]   ;;  %v5636_v8 = vld [vmem:[%s6705_s15 + $0x2e8] ss:$16 sps:$4 sm:$0xff]  }
 0x261   : > { %2219 = vmatpush1.bf16.msra.mxu0 %v5553_v9  ;;  %2301 = vmatpush1.bf16.msra.mxu1 %v5554_v10  ;;  %v5641_v9 = vld [vmem:[%s6705_s15 + $0x304] ss:$16 sps:$4 sm:$0xff]   ;;  %v5644_v10 = vld [vmem:[%s6705_s15 + $0x30c] ss:$16 sps:$4 sm:$0xff]  }
 0x262   : > { %2220 = vmatprep.subr.bf16.mxu0 %v5555_v11  ;;  %2302 = vmatprep.subr.bf16.mxu1 %v5557_v12  ;;  %v5639_v11 = vld [vmem:[%s6705_s15 + $0x300] ss:$16 sps:$4 sm:$0xff]   ;;  %v5642_v12 = vld [vmem:[%s6705_s15 + $0x308] ss:$16 sps:$4 sm:$0xff]  }
 0x265   : > { %2221 = vmatpush1.bf16.msra.mxu0 %v5559_v13  ;;  %2303 = vmatpush1.bf16.msra.mxu1 %v5560_v14  ;;  %v5647_v13 = vld [vmem:[%s6705_s15 + $0x324] ss:$16 sps:$4 sm:$0xff]   ;;  %v5650_v14 = vld [vmem:[%s6705_s15 + $0x32c] ss:$16 sps:$4 sm:$0xff]  }
 0x266   : > { %2222 = vmatprep.subr.bf16.mxu0 %v5561_v15  ;;  %2304 = vmatprep.subr.bf16.mxu1 %v5563_v16  ;;  %v5645_v15 = vld [vmem:[%s6705_s15 + $0x320] ss:$16 sps:$4 sm:$0xff]   ;;  %v5648_v16 = vld [vmem:[%s6705_s15 + $0x328] ss:$16 sps:$4 sm:$0xff]  }
 0x269   : > { %2223 = vmatpush1.bf16.msra.mxu0 %v5565_v18  ;;  %2305 = vmatpush1.bf16.msra.mxu1 %v5566_v20  ;;  %v5656_v18 = vld [vmem:[%s6705_s15 + $0x34c] ss:$16 sps:$4 sm:$0xff]   ;;  %v5654_v20 = vld [vmem:[%s6705_s15 + $0x348] ss:$16 sps:$4 sm:$0xff]  }
 0x26a   : > { %2224 = vmatprep.subr.bf16.mxu0 %v5567_v21  ;;  %2306 = vmatprep.subr.bf16.mxu1 %v5569_v22  ;;  %v5659_v21 = vld [vmem:[%s6705_s15 + $0x364] ss:$16 sps:$4 sm:$0xff]   ;;  %v5662_v22 = vld [vmem:[%s6705_s15 + $0x36c] ss:$16 sps:$4 sm:$0xff]  }
 0x26d   : > { %2225 = vmatpush1.bf16.msra.mxu0 %v5571_v23  ;;  %2307 = vmatpush1.bf16.msra.mxu1 %v5572_v24  ;;  %v5657_v23 = vld [vmem:[%s6705_s15 + $0x360] ss:$16 sps:$4 sm:$0xff]   ;;  %v5660_v24 = vld [vmem:[%s6705_s15 + $0x368] ss:$16 sps:$4 sm:$0xff]  }
 0x26e   : > { %2226 = vmatprep.subr.bf16.mxu0 %v5573_v25  ;;  %2308 = vmatprep.subr.bf16.mxu1 %v5575_v26  ;;  %v5665_v25 = vld [vmem:[%s6705_s15 + $0x384] ss:$16 sps:$4 sm:$0xff]   ;;  %v5668_v26 = vld [vmem:[%s6705_s15 + $0x38c] ss:$16 sps:$4 sm:$0xff]  }
 0x271   : > { %2227 = vmatpush1.bf16.msra.mxu0 %v5577_v27  ;;  %2309 = vmatpush1.bf16.msra.mxu1 %v5578_v28  ;;  %v5663_v27 = vld [vmem:[%s6705_s15 + $0x380] ss:$16 sps:$4 sm:$0xff]   ;;  %v5666_v28 = vld [vmem:[%s6705_s15 + $0x388] ss:$16 sps:$4 sm:$0xff]  }
 0x272   : > { %2228 = vmatprep.subr.bf16.mxu0 %v5579_v29  ;;  %2310 = vmatprep.subr.bf16.mxu1 %v5581_v30  ;;  %v5671_v29 = vld [vmem:[%s6705_s15 + $0x3a4] ss:$16 sps:$4 sm:$0xff]   ;;  %v5674_v30 = vld [vmem:[%s6705_s15 + $0x3ac] ss:$16 sps:$4 sm:$0xff]  }
 0x275   : > { %2229 = vmatpush1.bf16.msra.mxu0 %v5583_v31  ;;  %2311 = vmatpush1.bf16.msra.mxu1 %v5584_v32  ;;  %v5669_v31 = vld [vmem:[%s6705_s15 + $0x3a0] ss:$16 sps:$4 sm:$0xff]   ;;  %v5672_v32 = vld [vmem:[%s6705_s15 + $0x3a8] ss:$16 sps:$4 sm:$0xff]  }
 0x276   : > { %2230 = vmatprep.subr.bf16.mxu0 %v5585_v33  ;;  %2312 = vmatprep.subr.bf16.mxu1 %v5587_v34  ;;  %v5677_v33 = vld [vmem:[%s6705_s15 + $0x3c4] ss:$16 sps:$4 sm:$0xff]   ;;  %v5680_v34 = vld [vmem:[%s6705_s15 + $0x3cc] ss:$16 sps:$4 sm:$0xff]  }
 0x279   : > { %2231 = vmatpush1.bf16.msra.mxu0 %v5589_v35  ;;  %2313 = vmatpush1.bf16.msra.mxu1 %v5590_v36  ;;  %v5675_v35 = vld [vmem:[%s6705_s15 + $0x3c0] ss:$16 sps:$4 sm:$0xff]   ;;  %v5678_v36 = vld [vmem:[%s6705_s15 + $0x3c8] ss:$16 sps:$4 sm:$0xff]  }
 0x27a   : > { %2241 = vmatprep.subr.bf16.mxu0 %v5593_v38  ;;  %2323 = vmatprep.subr.bf16.mxu1 %v5596_v39  ;;  %v5686_v38 = vld [vmem:[%s6705_s15 + $0x3ec] ss:$16 sps:$4 sm:$0xff]   ;;  %v5681_v39 = vld [vmem:[%s6705_s15 + $0x3e0] ss:$16 sps:$4 sm:$0xff]  }
 0x27c   : > { %2233 = vmatmul.mubr.bf16.vlgmr.msra.gmra.mrb[0].mxu0 %v1391_v40  ;;  %2315 = vmatmul.mubr.bf16.vlgmr.msra.gmra.mrb[0].mxu1 %v1391_v40  ;;  %v5684_v40 = vld [vmem:[%s6705_s15 + $0x3e8] ss:$16 sps:$4 sm:$0xff]  }
 0x27d   : > { %2242 = vmatpush1.bf16.msra.mxu0 %v5591_v41  ;;  %2324 = vmatpush1.bf16.msra.mxu1 %v5594_v42  ;;  %v6847_v41 = vld [vmem:[#allocation2 + $0x10] sm:$0xff]  ;;  %v5689_v42 = vld [vmem:[%s6705_s15 + $0x404] ss:$16 sps:$4 sm:$0xff]  }
 0x27e   : > { %2243 = vmatprep.subr.bf16.mxu0 %v5599_v43  ;;  %2325 = vmatprep.subr.bf16.mxu1 %v5602_v44  ;;  %v5692_v43 = vld [vmem:[%s6705_s15 + $0x604] ss:$16 sps:$4 sm:$0xff]   ;;  %v5687_v44 = vld [vmem:[%s6705_s15 + $0x400] ss:$16 sps:$4 sm:$0xff]  }
 0x27f   : > { %2273 = vmatprep.mubr.bf16.mxu0 %v1394_v4  ;;  %2355 = vmatprep.mubr.bf16.mxu1 %v1394_v4  ;;  %v5728_v4 = vld [vmem:[%s6705_s15 + $0x6c4] ss:$16 sps:$4 sm:$0xff]  }
 0x281   : > { %2244 = vmatpush1.bf16.msra.mxu0 %v5597_v45  ;;  %2326 = vmatpush1.bf16.msra.mxu1 %v5600_v46  ;;  %v5690_v45 = vld [vmem:[%s6705_s15 + $0x600] ss:$16 sps:$4 sm:$0xff]   ;;  %v1393_v46 = vpack.c.bf16 %v6847_v41, %v6847_v41 }
 0x282   : > { %2245 = vmatprep.subr.bf16.mxu0 %v5605_v47  ;;  %2327 = vmatprep.subr.bf16.mxu1 %v5608_v48  ;;  %v5695_v47 = vld [vmem:[%s6705_s15 + $0x424] ss:$16 sps:$4 sm:$0xff]  }
 0x283   : > { %v5698_v48 = vld [vmem:[%s6705_s15 + $0x624] ss:$16 sps:$4 sm:$0xff]  }
 0x285   : > { %2246 = vmatpush1.bf16.msra.mxu0 %v5603_v49  ;;  %2328 = vmatpush1.bf16.msra.mxu1 %v5606_v50  ;;  %v5693_v49 = vld [vmem:[%s6705_s15 + $0x420] ss:$16 sps:$4 sm:$0xff]  }
 0x286   : > { %2247 = vmatprep.subr.bf16.mxu0 %v5611_v51  ;;  %2329 = vmatprep.subr.bf16.mxu1 %v5614_v52  ;;  %v5696_v50 = vld [vmem:[%s6705_s15 + $0x620] ss:$16 sps:$4 sm:$0xff]   ;;  %v5701_v51 = vld [vmem:[%s6705_s15 + $0x444] ss:$16 sps:$4 sm:$0xff]  }
 0x287   : > { %v5704_v52 = vld [vmem:[%s6705_s15 + $0x644] ss:$16 sps:$4 sm:$0xff]  }
 0x289   : > { %2248 = vmatpush1.bf16.msra.mxu0 %v5609_v53  ;;  %2330 = vmatpush1.bf16.msra.mxu1 %v5612_v54  ;;  %v5699_v53 = vld [vmem:[%s6705_s15 + $0x440] ss:$16 sps:$4 sm:$0xff]  }
 0x28a   : > { %2249 = vmatprep.subr.bf16.mxu0 %v5617_v55  ;;  %2331 = vmatprep.subr.bf16.mxu1 %v5620_v56  ;;  %v5702_v54 = vld [vmem:[%s6705_s15 + $0x640] ss:$16 sps:$4 sm:$0xff]   ;;  %v5707_v55 = vld [vmem:[%s6705_s15 + $0x464] ss:$16 sps:$4 sm:$0xff]  }
 0x28b   : > { %v5710_v56 = vld [vmem:[%s6705_s15 + $0x664] ss:$16 sps:$4 sm:$0xff]  }
 0x28d   : > { %2250 = vmatpush1.bf16.msra.mxu0 %v5615_v57  ;;  %2332 = vmatpush1.bf16.msra.mxu1 %v5618_v58  ;;  %v5705_v57 = vld [vmem:[%s6705_s15 + $0x460] ss:$16 sps:$4 sm:$0xff]  }
 0x28e   : > { %2251 = vmatprep.subr.bf16.mxu0 %v5623_v59  ;;  %2333 = vmatprep.subr.bf16.mxu1 %v5626_v60  ;;  %v5708_v58 = vld [vmem:[%s6705_s15 + $0x660] ss:$16 sps:$4 sm:$0xff]   ;;  %v5713_v59 = vld [vmem:[%s6705_s15 + $0x484] ss:$16 sps:$4 sm:$0xff]  }
 0x28f   : > { %v5716_v60 = vld [vmem:[%s6705_s15 + $0x684] ss:$16 sps:$4 sm:$0xff]  }
 0x291   : > { %2252 = vmatpush1.bf16.msra.mxu0 %v5621_v61  ;;  %2334 = vmatpush1.bf16.msra.mxu1 %v5624_v62  ;;  %v5711_v61 = vld [vmem:[%s6705_s15 + $0x480] ss:$16 sps:$4 sm:$0xff]  }
 0x292   : > { %2253 = vmatprep.subr.bf16.mxu0 %v5629_v63  ;;  %2335 = vmatprep.subr.bf16.mxu1 %v5632_v0  ;;  %v5714_v62 = vld [vmem:[%s6705_s15 + $0x680] ss:$16 sps:$4 sm:$0xff]   ;;  %v5719_v63 = vld [vmem:[%s6705_s15 + $0x4a4] ss:$16 sps:$4 sm:$0xff]  }
 0x293   : > { %v5722_v0 = vld [vmem:[%s6705_s15 + $0x6a4] ss:$16 sps:$4 sm:$0xff]  }
 0x295   : > { %2254 = vmatpush1.bf16.msra.mxu0 %v5627_v2  ;;  %2336 = vmatpush1.bf16.msra.mxu1 %v5630_v3  ;;  %v5720_v2 = vld [vmem:[%s6705_s15 + $0x6a0] ss:$16 sps:$4 sm:$0xff]   ;;  %v5725_v3 = vld [vmem:[%s6705_s15 + $0x4c4] ss:$16 sps:$4 sm:$0xff]  }
 0x296   : > { %2255 = vmatprep.subr.bf16.mxu0 %v5635_v5  ;;  %2337 = vmatprep.subr.bf16.mxu1 %v5638_v6  ;;  %v5723_v5 = vld [vmem:[%s6705_s15 + $0x4c0] ss:$16 sps:$4 sm:$0xff]  }
 0x297   : > { %v5726_v6 = vld [vmem:[%s6705_s15 + $0x6c0] ss:$16 sps:$4 sm:$0xff]  }
 0x299   : > { %2256 = vmatpush1.bf16.msra.mxu0 %v5633_v7  ;;  %2338 = vmatpush1.bf16.msra.mxu1 %v5636_v8  ;;  %v5731_v7 = vld [vmem:[%s6705_s15 + $0x4e4] ss:$16 sps:$4 sm:$0xff]  }
 0x29a   : > { %2257 = vmatprep.subr.bf16.mxu0 %v5641_v9  ;;  %2339 = vmatprep.subr.bf16.mxu1 %v5644_v10  ;;  %v5734_v8 = vld [vmem:[%s6705_s15 + $0x6e4] ss:$16 sps:$4 sm:$0xff]   ;;  %v5729_v9 = vld [vmem:[%s6705_s15 + $0x4e0] ss:$16 sps:$4 sm:$0xff]  }
 0x29b   : > { %v5732_v10 = vld [vmem:[%s6705_s15 + $0x6e0] ss:$16 sps:$4 sm:$0xff]  }
 0x29d   : > { %2258 = vmatpush1.bf16.msra.mxu0 %v5639_v11  ;;  %2340 = vmatpush1.bf16.msra.mxu1 %v5642_v12  ;;  %v5737_v11 = vld [vmem:[%s6705_s15 + $0x504] ss:$16 sps:$4 sm:$0xff]  }
 0x29e   : > { %2259 = vmatprep.subr.bf16.mxu0 %v5647_v13  ;;  %2341 = vmatprep.subr.bf16.mxu1 %v5650_v14  ;;  %v5740_v12 = vld [vmem:[%s6705_s15 + $0x704] ss:$16 sps:$4 sm:$0xff]   ;;  %v5735_v13 = vld [vmem:[%s6705_s15 + $0x500] ss:$16 sps:$4 sm:$0xff]  }
 0x29f   : > { %v5738_v14 = vld [vmem:[%s6705_s15 + $0x700] ss:$16 sps:$4 sm:$0xff]  }
 0x2a1   : > { %2260 = vmatpush1.bf16.msra.mxu0 %v5645_v15  ;;  %2342 = vmatpush1.bf16.msra.mxu1 %v5648_v16  ;;  %v5743_v15 = vld [vmem:[%s6705_s15 + $0x524] ss:$16 sps:$4 sm:$0xff]  }
 0x2a2   : > { %2261 = vmatprep.subr.bf16.mxu0 %v5653_v17  ;;  %2343 = vmatprep.subr.bf16.mxu1 %v5656_v18  ;;  %v5746_v16 = vld [vmem:[%s6705_s15 + $0x724] ss:$16 sps:$4 sm:$0xff]   ;;  %v5741_v17 = vld [vmem:[%s6705_s15 + $0x520] ss:$16 sps:$4 sm:$0xff]  }
 0x2a3   : > { %v5744_v18 = vld [vmem:[%s6705_s15 + $0x720] ss:$16 sps:$4 sm:$0xff]  }
 0x2a5   : > { %2262 = vmatpush1.bf16.msra.mxu0 %v5651_v19  ;;  %2344 = vmatpush1.bf16.msra.mxu1 %v5654_v20  ;;  %v5749_v19 = vld [vmem:[%s6705_s15 + $0x544] ss:$16 sps:$4 sm:$0xff]  }
 0x2a6   : > { %2263 = vmatprep.subr.bf16.mxu0 %v5659_v21  ;;  %2345 = vmatprep.subr.bf16.mxu1 %v5662_v22  ;;  %v5752_v20 = vld [vmem:[%s6705_s15 + $0x744] ss:$16 sps:$4 sm:$0xff]   ;;  %v5747_v21 = vld [vmem:[%s6705_s15 + $0x540] ss:$16 sps:$4 sm:$0xff]  }
 0x2a7   : > { %v5750_v22 = vld [vmem:[%s6705_s15 + $0x740] ss:$16 sps:$4 sm:$0xff]  }
 0x2a9   : > { %2264 = vmatpush1.bf16.msra.mxu0 %v5657_v23  ;;  %2346 = vmatpush1.bf16.msra.mxu1 %v5660_v24  ;;  %v5755_v23 = vld [vmem:[%s6705_s15 + $0x564] ss:$16 sps:$4 sm:$0xff]  }
 0x2aa   : > { %2265 = vmatprep.subr.bf16.mxu0 %v5665_v25  ;;  %2347 = vmatprep.subr.bf16.mxu1 %v5668_v26  ;;  %v5758_v24 = vld [vmem:[%s6705_s15 + $0x764] ss:$16 sps:$4 sm:$0xff]   ;;  %v5753_v25 = vld [vmem:[%s6705_s15 + $0x560] ss:$16 sps:$4 sm:$0xff]  }
 0x2ab   : > { %v5756_v26 = vld [vmem:[%s6705_s15 + $0x760] ss:$16 sps:$4 sm:$0xff]  }
 0x2ad   : > { %2266 = vmatpush1.bf16.msra.mxu0 %v5663_v27  ;;  %2348 = vmatpush1.bf16.msra.mxu1 %v5666_v28  ;;  %v5761_v27 = vld [vmem:[%s6705_s15 + $0x584] ss:$16 sps:$4 sm:$0xff]  }
 0x2ae   : > { %2267 = vmatprep.subr.bf16.mxu0 %v5671_v29  ;;  %2349 = vmatprep.subr.bf16.mxu1 %v5674_v30  ;;  %v5764_v28 = vld [vmem:[%s6705_s15 + $0x784] ss:$16 sps:$4 sm:$0xff]   ;;  %v5759_v29 = vld [vmem:[%s6705_s15 + $0x580] ss:$16 sps:$4 sm:$0xff]  }
 0x2af   : > { %v5762_v30 = vld [vmem:[%s6705_s15 + $0x780] ss:$16 sps:$4 sm:$0xff]  }
 0x2b1   : > { %2268 = vmatpush1.bf16.msra.mxu0 %v5669_v31  ;;  %2350 = vmatpush1.bf16.msra.mxu1 %v5672_v32  ;;  %v5767_v31 = vld [vmem:[%s6705_s15 + $0x5a4] ss:$16 sps:$4 sm:$0xff]  }
 0x2b2   : > { %2269 = vmatprep.subr.bf16.mxu0 %v5677_v33  ;;  %2351 = vmatprep.subr.bf16.mxu1 %v5680_v34  ;;  %v5770_v32 = vld [vmem:[%s6705_s15 + $0x7a4] ss:$16 sps:$4 sm:$0xff]   ;;  %v5765_v33 = vld [vmem:[%s6705_s15 + $0x5a0] ss:$16 sps:$4 sm:$0xff]  }
 0x2b3   : > { %v5768_v34 = vld [vmem:[%s6705_s15 + $0x7a0] ss:$16 sps:$4 sm:$0xff]  }
 0x2b5   : > { %2270 = vmatpush1.bf16.msra.mxu0 %v5675_v35  ;;  %2352 = vmatpush1.bf16.msra.mxu1 %v5678_v36  ;;  %v5773_v35 = vld [vmem:[%s6705_s15 + $0x5c4] ss:$16 sps:$4 sm:$0xff]  }
 0x2b6   : > { %2271 = vmatprep.subr.bf16.mxu0 %v5683_v37  ;;  %2353 = vmatprep.subr.bf16.mxu1 %v5686_v38  ;;  %v5776_v36 = vld [vmem:[%s6705_s15 + $0x7c4] ss:$16 sps:$4 sm:$0xff]   ;;  %v5771_v37 = vld [vmem:[%s6705_s15 + $0x5c0] ss:$16 sps:$4 sm:$0xff]  }
 0x2b7   : > { %v5774_v38 = vld [vmem:[%s6705_s15 + $0x7c0] ss:$16 sps:$4 sm:$0xff]  }
 0x2b9   : > { %2272 = vmatpush1.bf16.msra.mxu0 %v5681_v39  ;;  %2354 = vmatpush1.bf16.msra.mxu1 %v5684_v40  ;;  %v5779_v39 = vld [vmem:[%s6705_s15 + $0x5e4] ss:$16 sps:$4 sm:$0xff]  }
 0x2ba   : > { %3177 = vmatprep.subr.bf16.mxu0 %v5689_v42  ;;  %3218 = vmatprep.subr.bf16.mxu1 %v5692_v43  ;;  %v5782_v40 = vld [vmem:[%s6705_s15 + $0x7e4] ss:$16 sps:$4 sm:$0xff]   ;;  %v5777_v42 = vld [vmem:[%s6705_s15 + $0x5e0] ss:$16 sps:$4 sm:$0xff]  }
 0x2bb   : > { %v5780_v43 = vld [vmem:[%s6705_s15 + $0x7e0] ss:$16 sps:$4 sm:$0xff]  }
 0x2bc   : > { %2274 = vmatmul.mubr.bf16.vlgmr.msra.gmra.mrb[0].mxu0 %v1393_v46  ;;  %2356 = vmatmul.mubr.bf16.vlgmr.msra.gmra.mrb[0].mxu1 %v1393_v46  ;;  %v1524_v46 = vlaneseq }
 0x2bd   : > { %3178 = vmatpush1.bf16.msra.mxu0 %v5687_v44  ;;  %3219 = vmatpush1.bf16.msra.mxu1 %v5690_v45  ;;  %v5785_v44 = vld [vmem:[%s6705_s15 + $0x40c] ss:$16 sps:$4 sm:$0xff]  }
 0x2be   : > { %3179 = vmatprep.subr.bf16.mxu0 %v5695_v47  ;;  %3220 = vmatprep.subr.bf16.mxu1 %v5698_v48  ;;  %v5788_v45 = vld [vmem:[%s6705_s15 + $0x60c] ss:$16 sps:$4 sm:$0xff]   ;;  %v6917_v47 = vshrl.u32 %v1524_v46, 7  ;;  %v5825_v46 = vld [vmem:[%s6705_s15 + $0x4e8] ss:$16 sps:$4 sm:$0xff]  }
 0x2c0   : > { %v6920_v48 = vsub.s32 0, %v6917_v47 }
 0x2c1   : > { %3180 = vmatpush1.bf16.msra.mxu0 %v5693_v49  ;;  %3221 = vmatpush1.bf16.msra.mxu1 %v5696_v50  ;;  %v1534_v49 = vsub.s32 4, %v6917_v47  ;;  %v6925_v50 = vld [vmem:[%s373_s14] sm:$0xff] }
 0x2c2   : > { %3181 = vmatprep.subr.bf16.mxu0 %v5701_v51  ;;  %3222 = vmatprep.subr.bf16.mxu1 %v5704_v52  ;;  %v1530_v51 = vsub.s32 2, %v6917_v47  ;;  %v1538_v52 = vsub.s32 6, %v6917_v47 }
 0x2c5   : > { %3182 = vmatpush1.bf16.msra.mxu0 %v5699_v53  ;;  %3223 = vmatpush1.bf16.msra.mxu1 %v5702_v54  ;;  %v1527_v53 = vrot.slane %v6925_v50, %v6920_v48  ;;  %v1535_v54 = vrot.slane %v6925_v50, %v1534_v49  ;;  %v5828_v49 = vld [vmem:[%s6705_s15 + $0x6e8] ss:$16 sps:$4 sm:$0xff]  }
 0x2c6   : > { %3183 = vmatprep.subr.bf16.mxu0 %v5707_v55  ;;  %3224 = vmatprep.subr.bf16.mxu1 %v5710_v56  ;;  %v1531_v55 = vrot.slane %v6925_v50, %v1530_v51  ;;  %v1539_v56 = vrot.slane %v6925_v50, %v1538_v52  ;;  %v5833_v52 = vld [vmem:[%s6705_s15 + $0x50c] ss:$16 sps:$4 sm:$0xff]  }
 0x2c9   : > { %3184 = vmatpush1.bf16.msra.mxu0 %v5705_v57  ;;  %3225 = vmatpush1.bf16.msra.mxu1 %v5708_v58  ;;  %v1547_v57 = vrot.slane %v1527_v53, %v6920_v48  ;;  %v1555_v58 = vrot.slane %v1535_v54, %v6920_v48  ;;  %v5836_v53 = vld [vmem:[%s6705_s15 + $0x70c] ss:$16 sps:$4 sm:$0xff]   ;;  %v5831_v54 = vld [vmem:[%s6705_s15 + $0x508] ss:$16 sps:$4 sm:$0xff]  }
 0x2ca   : > { %3185 = vmatprep.subr.bf16.mxu0 %v5713_v59  ;;  %3226 = vmatprep.subr.bf16.mxu1 %v5716_v60  ;;  %v1551_v59 = vrot.slane %v1531_v55, %v6920_v48  ;;  %v1559_v60 = vrot.slane %v1539_v56, %v6920_v48  ;;  %v5834_v55 = vld [vmem:[%s6705_s15 + $0x708] ss:$16 sps:$4 sm:$0xff]   ;;  %v5839_v56 = vld [vmem:[%s6705_s15 + $0x52c] ss:$16 sps:$4 sm:$0xff]  }
 0x2cd   : > { %3186 = vmatpush1.bf16.msra.mxu0 %v5711_v61  ;;  %3227 = vmatpush1.bf16.msra.mxu1 %v5714_v62 }
 0x2ce   : > { %3187 = vmatprep.subr.bf16.mxu0 %v5719_v63  ;;  %3228 = vmatprep.subr.bf16.mxu1 %v5722_v0 }
 0x2d1   : > { %3188 = vmatpush1.bf16.msra.mxu0 %v5717_v1  ;;  %3229 = vmatpush1.bf16.msra.mxu1 %v5720_v2 }
 0x2d2   : > { %3189 = vmatprep.subr.bf16.mxu0 %v5725_v3  ;;  %3230 = vmatprep.subr.bf16.mxu1 %v5728_v4 }
 0x2d5   : > { %3190 = vmatpush1.bf16.msra.mxu0 %v5723_v5  ;;  %3231 = vmatpush1.bf16.msra.mxu1 %v5726_v6 }
 0x2d6   : > { %3191 = vmatprep.subr.bf16.mxu0 %v5731_v7  ;;  %3232 = vmatprep.subr.bf16.mxu1 %v5734_v8 }
 0x2d9   : > { %3192 = vmatpush1.bf16.msra.mxu0 %v5729_v9  ;;  %3233 = vmatpush1.bf16.msra.mxu1 %v5732_v10 }
 0x2da   : > { %3193 = vmatprep.subr.bf16.mxu0 %v5737_v11  ;;  %3234 = vmatprep.subr.bf16.mxu1 %v5740_v12 }
 0x2dd   : > { %3194 = vmatpush1.bf16.msra.mxu0 %v5735_v13  ;;  %3235 = vmatpush1.bf16.msra.mxu1 %v5738_v14 }
 0x2de   : > { %3195 = vmatprep.subr.bf16.mxu0 %v5743_v15  ;;  %3236 = vmatprep.subr.bf16.mxu1 %v5746_v16  ;;  %v5783_v15 = vld [vmem:[%s6705_s15 + $0x408] ss:$16 sps:$4 sm:$0xff]  }
 0x2df   : > { %v5786_v16 = vld [vmem:[%s6705_s15 + $0x608] ss:$16 sps:$4 sm:$0xff]  }
 0x2e1   : > { %3196 = vmatpush1.bf16.msra.mxu0 %v5741_v17  ;;  %3237 = vmatpush1.bf16.msra.mxu1 %v5744_v18 }
 0x2e2   : > { %3197 = vmatprep.subr.bf16.mxu0 %v5749_v19  ;;  %3238 = vmatprep.subr.bf16.mxu1 %v5752_v20  ;;  %v5791_v19 = vld [vmem:[%s6705_s15 + $0x42c] ss:$16 sps:$4 sm:$0xff]  }
 0x2e3   : > { %v5794_v20 = vld [vmem:[%s6705_s15 + $0x62c] ss:$16 sps:$4 sm:$0xff]  }
 0x2e5   : > { %3198 = vmatpush1.bf16.msra.mxu0 %v5747_v21  ;;  %3239 = vmatpush1.bf16.msra.mxu1 %v5750_v22  ;;  %v5789_v21 = vld [vmem:[%s6705_s15 + $0x428] ss:$16 sps:$4 sm:$0xff]  }
 0x2e6   : > { %3199 = vmatprep.subr.bf16.mxu0 %v5755_v23  ;;  %3240 = vmatprep.subr.bf16.mxu1 %v5758_v24  ;;  %v5792_v22 = vld [vmem:[%s6705_s15 + $0x628] ss:$16 sps:$4 sm:$0xff]   ;;  %v5797_v23 = vld [vmem:[%s6705_s15 + $0x44c] ss:$16 sps:$4 sm:$0xff]  }
 0x2e7   : > { %v5800_v24 = vld [vmem:[%s6705_s15 + $0x64c] ss:$16 sps:$4 sm:$0xff]  }
 0x2e9   : > { %3200 = vmatpush1.bf16.msra.mxu0 %v5753_v25  ;;  %3241 = vmatpush1.bf16.msra.mxu1 %v5756_v26  ;;  %v5795_v25 = vld [vmem:[%s6705_s15 + $0x448] ss:$16 sps:$4 sm:$0xff]  }
 0x2ea   : > { %3201 = vmatprep.subr.bf16.mxu0 %v5761_v27  ;;  %3242 = vmatprep.subr.bf16.mxu1 %v5764_v28  ;;  %v5798_v26 = vld [vmem:[%s6705_s15 + $0x648] ss:$16 sps:$4 sm:$0xff]   ;;  %v5803_v27 = vld [vmem:[%s6705_s15 + $0x46c] ss:$16 sps:$4 sm:$0xff]  }
 0x2eb   : > { %v5806_v28 = vld [vmem:[%s6705_s15 + $0x66c] ss:$16 sps:$4 sm:$0xff]  }
 0x2ed   : > { %3202 = vmatpush1.bf16.msra.mxu0 %v5759_v29  ;;  %3243 = vmatpush1.bf16.msra.mxu1 %v5762_v30  ;;  %v5801_v29 = vld [vmem:[%s6705_s15 + $0x468] ss:$16 sps:$4 sm:$0xff]  }
 0x2ee   : > { %3203 = vmatprep.subr.bf16.mxu0 %v5767_v31  ;;  %3244 = vmatprep.subr.bf16.mxu1 %v5770_v32  ;;  %v5804_v30 = vld [vmem:[%s6705_s15 + $0x668] ss:$16 sps:$4 sm:$0xff]   ;;  %v5809_v31 = vld [vmem:[%s6705_s15 + $0x48c] ss:$16 sps:$4 sm:$0xff]  }
 0x2ef   : > { %v5812_v32 = vld [vmem:[%s6705_s15 + $0x68c] ss:$16 sps:$4 sm:$0xff]  }
 0x2f1   : > { %3204 = vmatpush1.bf16.msra.mxu0 %v5765_v33  ;;  %3245 = vmatpush1.bf16.msra.mxu1 %v5768_v34  ;;  %v5807_v33 = vld [vmem:[%s6705_s15 + $0x488] ss:$16 sps:$4 sm:$0xff]  }
 0x2f2   : > { %3205 = vmatprep.subr.bf16.mxu0 %v5773_v35  ;;  %3246 = vmatprep.subr.bf16.mxu1 %v5776_v36  ;;  %v5810_v34 = vld [vmem:[%s6705_s15 + $0x688] ss:$16 sps:$4 sm:$0xff]   ;;  %v5815_v35 = vld [vmem:[%s6705_s15 + $0x4ac] ss:$16 sps:$4 sm:$0xff]  }
 0x2f3   : > { %v5818_v36 = vld [vmem:[%s6705_s15 + $0x6ac] ss:$16 sps:$4 sm:$0xff]  }
 0x2f5   : > { %3206 = vmatpush1.bf16.msra.mxu0 %v5771_v37  ;;  %3247 = vmatpush1.bf16.msra.mxu1 %v5774_v38  ;;  %v5813_v37 = vld [vmem:[%s6705_s15 + $0x4a8] ss:$16 sps:$4 sm:$0xff]  }
 0x2f6   : > { %3207 = vmatprep.subr.bf16.mxu0 %v5779_v39  ;;  %3248 = vmatprep.subr.bf16.mxu1 %v5782_v40  ;;  %v5816_v38 = vld [vmem:[%s6705_s15 + $0x6a8] ss:$16 sps:$4 sm:$0xff]   ;;  %v5821_v39 = vld [vmem:[%s6705_s15 + $0x4cc] ss:$16 sps:$4 sm:$0xff]  }
 0x2f7   : > { %v5824_v40 = vld [vmem:[%s6705_s15 + $0x6cc] ss:$16 sps:$4 sm:$0xff]  }
 0x2f9   : > { %3208 = vmatpush1.bf16.msra.mxu0 %v5777_v42  ;;  %3249 = vmatpush1.bf16.msra.mxu1 %v5780_v43  ;;  %v5819_v42 = vld [vmem:[%s6705_s15 + $0x4c8] ss:$16 sps:$4 sm:$0xff]  }
 0x2fa   : > { %3259 = vmatprep.subr.bf16.mxu0 %v5785_v44  ;;  %3300 = vmatprep.subr.bf16.mxu1 %v5788_v45  ;;  %v5822_v43 = vld [vmem:[%s6705_s15 + $0x6c8] ss:$16 sps:$4 sm:$0xff]   ;;  %v5827_v44 = vld [vmem:[%s6705_s15 + $0x4ec] ss:$16 sps:$4 sm:$0xff]  }
 0x2fb   : > { %v5830_v45 = vld [vmem:[%s6705_s15 + $0x6ec] ss:$16 sps:$4 sm:$0xff]  }
 0x38f   : > { %v2275_v61 = vpop.f32.mrb[0].mxu0  ;;  %v2357_v62 = vpop.f32.mrb[0].mxu1 }
 0x390   : > { %v5159_v63 = vadd.f32 %v2275_v61, %v1547_v57  ;;  %v5161_v0 = vadd.f32 %v2357_v62, %v1555_v58  ;;  %v2277_v1 = vpop.f32.mrb[1].mxu0  ;;  %v2359_v2 = vpop.f32.mrb[1].mxu1  ;;  %v5842_v57 = vld [vmem:[%s6705_s15 + $0x72c] ss:$16 sps:$4 sm:$0xff]   ;;  %v5837_v58 = vld [vmem:[%s6705_s15 + $0x528] ss:$16 sps:$4 sm:$0xff]  }
 0x391   : > { %v5160_v3 = vadd.f32 %v2277_v1, %v1551_v59  ;;  %v5162_v4 = vadd.f32 %v2359_v2, %v1559_v60  ;;  %v2279_v5 = vpop.f32.mrb[2].mxu0  ;;  %v2361_v6 = vpop.f32.mrb[2].mxu1  ;;  %v5840_v59 = vld [vmem:[%s6705_s15 + $0x728] ss:$16 sps:$4 sm:$0xff]   ;;  %v5845_v60 = vld [vmem:[%s6705_s15 + $0x54c] ss:$16 sps:$4 sm:$0xff]  }
 0x392   : > { %v2364_v7 = vmax.f32 %v5159_v63, 0.0  ;;  %v2366_v8 = vmax.f32 %v5161_v0, 0.0  ;;  %v2280_v9 = vpop.f32.mrb[3].mxu0  ;;  %v2362_v10 = vpop.f32.mrb[3].mxu1  ;;  %v5848_v61 = vld [vmem:[%s6705_s15 + $0x74c] ss:$16 sps:$4 sm:$0xff]  }
 0x393   : > { %v2365_v11 = vmax.f32 %v5160_v3, 0.0  ;;  %v2367_v12 = vmax.f32 %v5162_v4, 0.0  ;;  %v5843_v62 = vld [vmem:[%s6705_s15 + $0x548] ss:$16 sps:$4 sm:$0xff]   ;;  %v5851_v0 = vld [vmem:[%s6705_s15 + $0x56c] ss:$16 sps:$4 sm:$0xff]  }
 0x394   : > { %v6942_v17 = vpack.c.bf16 %v2364_v7, %v2364_v7  ;;  %v6944_v18 = vpack.c.bf16 %v2366_v8, %v2366_v8  ;;  %v5846_v63 = vld [vmem:[%s6705_s15 + $0x748] ss:$16 sps:$4 sm:$0xff]   ;;  %v5854_v1 = vld [vmem:[%s6705_s15 + $0x76c] ss:$16 sps:$4 sm:$0xff]  }
 0x395   : > { %v2369_v13 = vpack.c.bf16 %v2365_v11, %v2365_v11  ;;  %v2371_v14 = vpack.c.bf16 %v2367_v12, %v2367_v12  ;;  %v5849_v2 = vld [vmem:[%s6705_s15 + $0x568] ss:$16 sps:$4 sm:$0xff]   ;;  %v5857_v4 = vld [vmem:[%s6705_s15 + $0x58c] ss:$16 sps:$4 sm:$0xff]  }
 0x396   : > { %v5852_v3 = vld [vmem:[%s6705_s15 + $0x768] ss:$16 sps:$4 sm:$0xff]   ;;  %v5860_v5 = vld [vmem:[%s6705_s15 + $0x78c] ss:$16 sps:$4 sm:$0xff]  }
 0x397   : > { %3209 = vmatprep.mubr.bf16.mxu0 %v2369_v13  ;;  %3250 = vmatprep.mubr.bf16.mxu1 %v2371_v14  ;;  %v5855_v6 = vld [vmem:[%s6705_s15 + $0x588] ss:$16 sps:$4 sm:$0xff]   ;;  %v5863_v8 = vld [vmem:[%s6705_s15 + $0x5ac] ss:$16 sps:$4 sm:$0xff]  }
 0x398   : > { %3210 = vmatmul.mubr.bf16.vlgmr.msra.gmra.mrb[4].mxu0 %v6942_v17  ;;  %3251 = vmatmul.mubr.bf16.vlgmr.msra.gmra.mrb[4].mxu1 %v6944_v18  ;;  %v5858_v7 = vld [vmem:[%s6705_s15 + $0x788] ss:$16 sps:$4 sm:$0xff]   ;;  %v5866_v9 = vld [vmem:[%s6705_s15 + $0x7ac] ss:$16 sps:$4 sm:$0xff]  }
 0x399   : > { %3260 = vmatpush1.bf16.msra.mxu0 %v5783_v15  ;;  %3301 = vmatpush1.bf16.msra.mxu1 %v5786_v16  ;;  %v5861_v10 = vld [vmem:[%s6705_s15 + $0x5a8] ss:$16 sps:$4 sm:$0xff]   ;;  %v5869_v12 = vld [vmem:[%s6705_s15 + $0x5cc] ss:$16 sps:$4 sm:$0xff]  }
 0x39a   : > { %3291 = vmatprep.mubr.bf16.mxu0 %v2369_v13  ;;  %3332 = vmatprep.mubr.bf16.mxu1 %v2371_v14  ;;  %v5864_v11 = vld [vmem:[%s6705_s15 + $0x7a8] ss:$16 sps:$4 sm:$0xff]   ;;  %v5872_v13 = vld [vmem:[%s6705_s15 + $0x7cc] ss:$16 sps:$4 sm:$0xff]  }
 0x39b   : > { %3261 = vmatprep.subr.bf16.mxu0 %v5791_v19  ;;  %3302 = vmatprep.subr.bf16.mxu1 %v5794_v20  ;;  %v5867_v14 = vld [vmem:[%s6705_s15 + $0x5c8] ss:$16 sps:$4 sm:$0xff]   ;;  %v5875_v16 = vld [vmem:[%s6705_s15 + $0x5ec] ss:$16 sps:$4 sm:$0xff]  }
 0x39c   : > { %v5870_v15 = vld [vmem:[%s6705_s15 + $0x7c8] ss:$16 sps:$4 sm:$0xff]   ;;  %v5878_v19 = vld [vmem:[%s6705_s15 + $0x7ec] ss:$16 sps:$4 sm:$0xff]  }
 0x39d   : > { %3262 = vmatpush1.bf16.msra.mxu0 %v5789_v21  ;;  %3303 = vmatpush1.bf16.msra.mxu1 %v5792_v22  ;;  %v5873_v20 = vld [vmem:[%s6705_s15 + $0x5e8] ss:$16 sps:$4 sm:$0xff]   ;;  %v7011_v22 = vsub.s32 1, %v6917_v47 }
 0x39e   : > { %3263 = vmatprep.subr.bf16.mxu0 %v5797_v23  ;;  %3304 = vmatprep.subr.bf16.mxu1 %v5800_v24  ;;  %v5876_v21 = vld [vmem:[%s6705_s15 + $0x7e8] ss:$16 sps:$4 sm:$0xff]   ;;  %v2507_v23 = vsub.s32 3, %v6917_v47 }
 0x39f   : > { %v2504_v24 = vrot.slane %v6925_v50, %v7011_v22 }
 0x3a1   : > { %3264 = vmatpush1.bf16.msra.mxu0 %v5795_v25  ;;  %3305 = vmatpush1.bf16.msra.mxu1 %v5798_v26  ;;  %v2508_v25 = vrot.slane %v6925_v50, %v2507_v23  ;;  %v2524_v26 = vrot.slane %v2504_v24, %v7011_v22  ;;  %v5902_v24 = vld [vmem:[#allocation12 + $0x6c] ss:$16 sps:$4 sm:$0xff] (!%p5012_p7)  }
 0x3a2   : > { %3265 = vmatprep.subr.bf16.mxu0 %v5803_v27  ;;  %3306 = vmatprep.subr.bf16.mxu1 %v5806_v28 }
 0x3a3   : > { %v2528_v27 = vrot.slane %v2508_v25, %v7011_v22  ;;  %v5904_v25 = vld [vmem:[#allocation12 + $0x60] ss:$16 sps:$4 sm:$0xff] (!%p5012_p7)  }
 0x3a5   : > { %3266 = vmatpush1.bf16.msra.mxu0 %v5801_v29  ;;  %3307 = vmatpush1.bf16.msra.mxu1 %v5804_v30 }
 0x3a6   : > { %3267 = vmatprep.subr.bf16.mxu0 %v5809_v31  ;;  %3308 = vmatprep.subr.bf16.mxu1 %v5812_v32 }
 0x3a9   : > { %3268 = vmatpush1.bf16.msra.mxu0 %v5807_v33  ;;  %3309 = vmatpush1.bf16.msra.mxu1 %v5810_v34 }
 0x3aa   : > { %3269 = vmatprep.subr.bf16.mxu0 %v5815_v35  ;;  %3310 = vmatprep.subr.bf16.mxu1 %v5818_v36 }
 0x3ad   : > { %3270 = vmatpush1.bf16.msra.mxu0 %v5813_v37  ;;  %3311 = vmatpush1.bf16.msra.mxu1 %v5816_v38  ;;  %v5879_v38 = vld [vmem:[#allocation2] sm:$0xff] }
 0x3ae   : > { %3271 = vmatprep.subr.bf16.mxu0 %v5821_v39  ;;  %3312 = vmatprep.subr.bf16.mxu1 %v5824_v40  ;;  %v5880_v40 = vld [vmem:[#allocation2 + $0x8] sm:$0xff] }
 0x3b1   : > { %3272 = vmatpush1.bf16.msra.mxu0 %v5819_v42  ;;  %3313 = vmatpush1.bf16.msra.mxu1 %v5822_v43 }
 0x3b2   : > { %3273 = vmatprep.subr.bf16.mxu0 %v5827_v44  ;;  %3314 = vmatprep.subr.bf16.mxu1 %v5830_v45  ;;  %v2511_v45 = vsub.s32 5, %v6917_v47 }
 0x3b5   : > { %3274 = vmatpush1.bf16.msra.mxu0 %v5825_v46  ;;  %3315 = vmatpush1.bf16.msra.mxu1 %v5828_v49  ;;  %v2515_v46 = vsub.s32 7, %v6917_v47  ;;  %v2512_v49 = vrot.slane %v6925_v50, %v2511_v45  ;;  %v5934_v45 = vld [vmem:[#allocation12 + $0x100] ss:$16 sps:$4 sm:$0xff] (!%p5012_p7)  }
 0x3b6   : > { %3275 = vmatprep.subr.bf16.mxu0 %v5833_v52  ;;  %3316 = vmatprep.subr.bf16.mxu1 %v5836_v53 }
 0x3b7   : > { %v2516_v52 = vrot.slane %v6925_v50, %v2515_v46  ;;  %v2532_v53 = vrot.slane %v2512_v49, %v7011_v22  ;;  %v5935_v46 = vld [vmem:[#allocation12 + $0x108] ss:$16 sps:$4 sm:$0xff] (!%p5012_p7)   ;;  %v5936_v49 = vld [vmem:[#allocation12 + $0x124] ss:$16 sps:$4 sm:$0xff] (!%p5012_p7)  }
 0x3b9   : > { %3276 = vmatpush1.bf16.msra.mxu0 %v5831_v54  ;;  %3317 = vmatpush1.bf16.msra.mxu1 %v5834_v55  ;;  %v2536_v54 = vrot.slane %v2516_v52, %v7011_v22  ;;  %v5938_v52 = vld [vmem:[#allocation12 + $0x12c] ss:$16 sps:$4 sm:$0xff] (!%p5012_p7)  }
 0x3ba   : > { %3277 = vmatprep.subr.bf16.mxu0 %v5839_v56  ;;  %3318 = vmatprep.subr.bf16.mxu1 %v5842_v57 }
 0x3bd   : > { %3278 = vmatpush1.bf16.msra.mxu0 %v5837_v58  ;;  %3319 = vmatpush1.bf16.msra.mxu1 %v5840_v59 }
 0x3be   : > { %3279 = vmatprep.subr.bf16.mxu0 %v5845_v60  ;;  %3320 = vmatprep.subr.bf16.mxu1 %v5848_v61 }
 0x3c1   : > { %3280 = vmatpush1.bf16.msra.mxu0 %v5843_v62  ;;  %3321 = vmatpush1.bf16.msra.mxu1 %v5846_v63 }
 0x3c2   : > { %3281 = vmatprep.subr.bf16.mxu0 %v5851_v0  ;;  %3322 = vmatprep.subr.bf16.mxu1 %v5854_v1 }
 0x3c5   : > { %3282 = vmatpush1.bf16.msra.mxu0 %v5849_v2  ;;  %3323 = vmatpush1.bf16.msra.mxu1 %v5852_v3 }
 0x3c6   : > { %3283 = vmatprep.subr.bf16.mxu0 %v5857_v4  ;;  %3324 = vmatprep.subr.bf16.mxu1 %v5860_v5  ;;  %v5881_v4 = vld [vmem:[#allocation2 + $0x18] sm:$0xff] }
 0x3c9   : > { %3284 = vmatpush1.bf16.msra.mxu0 %v5855_v6  ;;  %3325 = vmatpush1.bf16.msra.mxu1 %v5858_v7  ;;  %v5882_v7 = vld [vmem:[#allocation12 + $0x4] ss:$16 sps:$4 sm:$0xff] (!%p5012_p7)  }
 0x3ca   : > { %3285 = vmatprep.subr.bf16.mxu0 %v5863_v8  ;;  %3326 = vmatprep.subr.bf16.mxu1 %v5866_v9  ;;  %v5884_v9 = vld [vmem:[#allocation12 + $0xc] ss:$16 sps:$4 sm:$0xff] (!%p5012_p7)  }
 0x3cd   : > { %3286 = vmatpush1.bf16.msra.mxu0 %v5861_v10  ;;  %3327 = vmatpush1.bf16.msra.mxu1 %v5864_v11  ;;  %v5886_v10 = vld [vmem:[#allocation12] ss:$16 sps:$4 sm:$0xff] (!%p5012_p7)   ;;  %v5887_v11 = vld [vmem:[#allocation12 + $0x8] ss:$16 sps:$4 sm:$0xff] (!%p5012_p7)  }
 0x3ce   : > { %3287 = vmatprep.subr.bf16.mxu0 %v5869_v12  ;;  %3328 = vmatprep.subr.bf16.mxu1 %v5872_v13  ;;  %v5890_v12 = vld [vmem:[#allocation12 + $0x2c] ss:$16 sps:$4 sm:$0xff] (!%p5012_p7)   ;;  %v5892_v13 = vld [vmem:[#allocation12 + $0x20] ss:$16 sps:$4 sm:$0xff] (!%p5012_p7)  }
 0x3d1   : > { %3288 = vmatpush1.bf16.msra.mxu0 %v5867_v14  ;;  %3329 = vmatpush1.bf16.msra.mxu1 %v5870_v15  ;;  %v5893_v14 = vld [vmem:[#allocation12 + $0x28] ss:$16 sps:$4 sm:$0xff] (!%p5012_p7)   ;;  %v5894_v15 = vld [vmem:[#allocation12 + $0x44] ss:$16 sps:$4 sm:$0xff] (!%p5012_p7)  }
 0x3d2   : > { %3289 = vmatprep.subr.bf16.mxu0 %v5875_v16  ;;  %3330 = vmatprep.subr.bf16.mxu1 %v5878_v19  ;;  %v5896_v16 = vld [vmem:[#allocation12 + $0x4c] ss:$16 sps:$4 sm:$0xff] (!%p5012_p7)   ;;  %v5898_v19 = vld [vmem:[#allocation12 + $0x40] ss:$16 sps:$4 sm:$0xff] (!%p5012_p7)  }
 0x3d5   : > { %3290 = vmatpush1.bf16.msra.mxu0 %v5873_v20  ;;  %3331 = vmatpush1.bf16.msra.mxu1 %v5876_v21  ;;  %v5899_v20 = vld [vmem:[#allocation12 + $0x48] ss:$16 sps:$4 sm:$0xff] (!%p5012_p7)   ;;  %v5900_v21 = vld [vmem:[#allocation12 + $0x64] ss:$16 sps:$4 sm:$0xff] (!%p5012_p7)  }
 0x3d6   : > { %4151 = vmatprep.subr.bf16.mxu0 (!%p5012_p7), %v5882_v7  ;;  %4233 = vmatprep.subr.bf16.mxu1 (!%p5012_p7), %v5884_v9  ;;  %v5965_v7 = vld [vmem:[#allocation12 + $0x1a8] ss:$16 sps:$4 sm:$0xff] (!%p5012_p7)   ;;  %v5968_v9 = vld [vmem:[#allocation12 + $0x1cc] ss:$16 sps:$4 sm:$0xff] (!%p5012_p7)  }
 0x3d8   : > { %3292 = vmatmul.mubr.bf16.vlgmr.msra.gmra.mrb[8].mxu0 %v6942_v17  ;;  %3333 = vmatmul.mubr.bf16.vlgmr.msra.gmra.mrb[8].mxu1 %v6944_v18 }
 0x3d9   : > { %4152 = vmatpush1.bf16.msra.mxu0 (!%p5012_p7), %v5886_v10  ;;  %4234 = vmatpush1.bf16.msra.mxu1 (!%p5012_p7), %v5887_v11  ;;  %v5970_v10 = vld [vmem:[#allocation12 + $0x1c0] ss:$16 sps:$4 sm:$0xff] (!%p5012_p7)   ;;  %v5971_v11 = vld [vmem:[#allocation12 + $0x1c8] ss:$16 sps:$4 sm:$0xff] (!%p5012_p7)  }
 0x3da   : > { %4235 = vmatprep.subr.bf16.mxu1 (!%p5012_p7), %v5890_v12  ;;  %v5974_v12 = vld [vmem:[#allocation12 + $0x1ec] ss:$16 sps:$4 sm:$0xff] (!%p5012_p7)  }
 0x3dd   : > { %4236 = vmatpush1.bf16.msra.mxu1 (!%p5012_p7), %v5893_v14  ;;  %v5977_v14 = vld [vmem:[#allocation12 + $0x1e8] ss:$16 sps:$4 sm:$0xff] (!%p5012_p7)  }
 0x3de   : > { %4237 = vmatprep.subr.bf16.mxu1 (!%p5012_p7), %v5896_v16  ;;  %v5983_v16 = vld [vmem:[#allocation12 + $0x20c] ss:$16 sps:$4 sm:$0xff] (!%p5012_p7)  }
 0x3e1   : > { %4238 = vmatpush1.bf16.msra.mxu1 (!%p5012_p7), %v5899_v20  ;;  %v5981_v20 = vld [vmem:[#allocation12 + $0x208] ss:$16 sps:$4 sm:$0xff] (!%p5012_p7)  }
 0x3e2   : > { %4239 = vmatprep.subr.bf16.mxu1 (!%p5012_p7), %v5902_v24  ;;  %v5986_v24 = vld [vmem:[#allocation12 + $0x224] ss:$16 sps:$4 sm:$0xff] (!%p5012_p7)  }
 0x46b   : > { %v3211_v28 = vpop.f32.mrb[4].mxu0  ;;  %v3252_v17 = vpop.f32.mrb[4].mxu1 }
 0x46c   : > { %v3212_v29 = vadd.f32 %v3211_v28, %v2524_v26  ;;  %v3213_v18 = vpop.f32.mrb[5].mxu0  ;;  %v3254_v30 = vpop.f32.mrb[5].mxu1  ;;  %v5905_v26 = vld [vmem:[#allocation12 + $0x68] ss:$16 sps:$4 sm:$0xff] (!%p5012_p7)   ;;  %v5908_v28 = vld [vmem:[#allocation12 + $0x8c] ss:$16 sps:$4 sm:$0xff] (!%p5012_p7)  }
 0x46d   : > { %v3214_v31 = vadd.f32 %v3213_v18, %v2528_v27  ;;  %v3215_v32 = vpop.f32.mrb[6].mxu0  ;;  %v3256_v33 = vpop.f32.mrb[6].mxu1  ;;  %v5906_v27 = vld [vmem:[#allocation12 + $0x84] ss:$16 sps:$4 sm:$0xff] (!%p5012_p7)   ;;  %4240 = vmatpush1.bf16.msra.mxu1 (!%p5012_p7), %v5905_v26 }
 0x46e   : > { %v3253_v34 = vadd.f32 %v3252_v17, %v3212_v29  ;;  %v3216_v35 = vpop.f32.mrb[7].mxu0  ;;  %v3257_v36 = vpop.f32.mrb[7].mxu1  ;;  %v5910_v17 = vld [vmem:[#allocation12 + $0x80] ss:$16 sps:$4 sm:$0xff] (!%p5012_p7)   ;;  %v5911_v29 = vld [vmem:[#allocation12 + $0x88] ss:$16 sps:$4 sm:$0xff] (!%p5012_p7)   ;;  %4241 = vmatprep.subr.bf16.mxu1 (!%p5012_p7), %v5908_v28 }
 0x46f   : > { %v3255_v37 = vadd.f32 %v3254_v30, %v3214_v31  ;;  %v5912_v18 = vld [vmem:[#allocation12 + $0xa4] ss:$16 sps:$4 sm:$0xff] (!%p5012_p7)   ;;  %v5914_v30 = vld [vmem:[#allocation12 + $0xac] ss:$16 sps:$4 sm:$0xff] (!%p5012_p7)   ;;  %v5916_v31 = vld [vmem:[#allocation12 + $0xa0] ss:$16 sps:$4 sm:$0xff] (!%p5012_p7)  }
 0x470   : > { %v3341_v39 = vadd.f32 %v5879_v38, %v3253_v34  ;;  %v5917_v32 = vld [vmem:[#allocation12 + $0xa8] ss:$16 sps:$4 sm:$0xff] (!%p5012_p7)   ;;  %v5918_v33 = vld [vmem:[#allocation12 + $0xc4] ss:$16 sps:$4 sm:$0xff] (!%p5012_p7)   ;;  %v5920_v34 = vld [vmem:[#allocation12 + $0xcc] ss:$16 sps:$4 sm:$0xff] (!%p5012_p7)  }
 0x471   : > { %v3342_v42 = vadd.f32 %v5880_v40, %v3255_v37  ;;  %4242 = vmatpush1.bf16.msra.mxu1 (!%p5012_p7), %v5911_v29  ;;  %v5922_v35 = vld [vmem:[#allocation12 + $0xc0] ss:$16 sps:$4 sm:$0xff] (!%p5012_p7)   ;;  %v5923_v36 = vld [vmem:[#allocation12 + $0xc8] ss:$16 sps:$4 sm:$0xff] (!%p5012_p7)   ;;  %v5924_v37 = vld [vmem:[#allocation12 + $0xe4] ss:$16 sps:$4 sm:$0xff] (!%p5012_p7)  }
 0x472   : > { %v7021_v43 = vmax.f32 %v3341_v39, 0.0  ;;  %4243 = vmatprep.subr.bf16.mxu1 (!%p5012_p7), %v5914_v30  ;;  %v5926_v38 = vld [vmem:[#allocation12 + $0xec] ss:$16 sps:$4 sm:$0xff] (!%p5012_p7)   ;;  %v5928_v39 = vld [vmem:[#allocation12 + $0xe0] ss:$16 sps:$4 sm:$0xff] (!%p5012_p7)  }
 0x473   : > { %v3346_v44 = vmax.f32 %v3342_v42, 0.0  ;;  %v5929_v40 = vld [vmem:[#allocation12 + $0xe8] ss:$16 sps:$4 sm:$0xff] (!%p5012_p7)   ;;  %v5930_v42 = vld [vmem:[#allocation12 + $0x104] ss:$16 sps:$4 sm:$0xff] (!%p5012_p7)  }
 0x474   : > { %3349 = vst [vmem:[#allocation2] sm:$0xff] %v7021_v43  ;;  %v5987_v28 = vld [vmem:[#allocation12 + $0x228] ss:$16 sps:$4 sm:$0xff] (!%p5012_p7)   ;;  %v5995_v29 = vld [vmem:[#allocation12 + $0x24c] ss:$16 sps:$4 sm:$0xff] (!%p5012_p7)  }
 0x475   : > { %3350 = vst [vmem:[#allocation2 + $0x8] sm:$0xff] %v3346_v44  ;;  %v3358_v8 = vpack.c.bf16 (!%p5012_p7), %v3346_v44, %v3346_v44  ;;  %4244 = vmatpush1.bf16.msra.mxu1 (!%p5012_p7), %v5917_v32  ;;  %v5932_v44 = vld [vmem:[#allocation12 + $0x10c] ss:$16 sps:$4 sm:$0xff] (!%p5012_p7)   ;;  %v5998_v30 = vld [vmem:[#allocation12 + $0x264] ss:$16 sps:$4 sm:$0xff] (!%p5012_p7)  }
 0x476   : > { %4245 = vmatprep.subr.bf16.mxu1 (!%p5012_p7), %v5920_v34  ;;  %v5999_v32 = vld [vmem:[#allocation12 + $0x268] ss:$16 sps:$4 sm:$0xff] (!%p5012_p7)   ;;  %v6007_v34 = vld [vmem:[#allocation12 + $0x28c] ss:$16 sps:$4 sm:$0xff] (!%p5012_p7)  }
 0x477   : > { %4183 = vmatprep.mubr.bf16.mxu0 (!%p5012_p7), %v3358_v8  ;;  %4265 = vmatprep.mubr.bf16.mxu1 (!%p5012_p7), %v3358_v8  ;;  %v5966_v8 = vld [vmem:[#allocation12 + $0x1c4] ss:$16 sps:$4 sm:$0xff] (!%p5012_p7)  }
 0x479   : > { %4246 = vmatpush1.bf16.msra.mxu1 (!%p5012_p7), %v5923_v36  ;;  %v6005_v36 = vld [vmem:[#allocation12 + $0x288] ss:$16 sps:$4 sm:$0xff] (!%p5012_p7)  }
 0x47a   : > { %4247 = vmatprep.subr.bf16.mxu1 (!%p5012_p7), %v5926_v38  ;;  %v6013_v38 = vld [vmem:[#allocation12 + $0x2ac] ss:$16 sps:$4 sm:$0xff] (!%p5012_p7)  }
 0x47d   : > { %4248 = vmatpush1.bf16.msra.mxu1 (!%p5012_p7), %v5929_v40  ;;  %v6011_v40 = vld [vmem:[#allocation12 + $0x2a8] ss:$16 sps:$4 sm:$0xff] (!%p5012_p7)  }
 0x47e   : > { %4249 = vmatprep.subr.bf16.mxu1 (!%p5012_p7), %v5932_v44  ;;  %v6019_v44 = vld [vmem:[#allocation12 + $0x2cc] ss:$16 sps:$4 sm:$0xff] (!%p5012_p7)  }
 0x481   : > { %4250 = vmatpush1.bf16.msra.mxu1 (!%p5012_p7), %v5935_v46  ;;  %v6017_v46 = vld [vmem:[#allocation12 + $0x2c8] ss:$16 sps:$4 sm:$0xff] (!%p5012_p7)  }
 0x482   : > { %4251 = vmatprep.subr.bf16.mxu1 (!%p5012_p7), %v5938_v52  ;;  %v6025_v52 = vld [vmem:[#allocation12 + $0x2ec] ss:$16 sps:$4 sm:$0xff] (!%p5012_p7)  }
 0x4ab   : > { %v3293_v55 = vpop.f32.mrb[8].mxu0  ;;  %v3334_v56 = vpop.f32.mrb[8].mxu1 }
 0x4ac   : > { %v3294_v57 = vadd.f32 %v3293_v55, %v2532_v53  ;;  %v3295_v58 = vpop.f32.mrb[9].mxu0  ;;  %v3336_v59 = vpop.f32.mrb[9].mxu1  ;;  %v5940_v53 = vld [vmem:[#allocation12 + $0x120] ss:$16 sps:$4 sm:$0xff] (!%p5012_p7)   ;;  %v5942_v55 = vld [vmem:[#allocation12 + $0x144] ss:$16 sps:$4 sm:$0xff] (!%p5012_p7)  }
 0x4ad   : > { %v3296_v60 = vadd.f32 %v3295_v58, %v2536_v54  ;;  %v3297_v61 = vpop.f32.mrb[10].mxu0  ;;  %v3338_v62 = vpop.f32.mrb[10].mxu1  ;;  %v5941_v54 = vld [vmem:[#allocation12 + $0x128] ss:$16 sps:$4 sm:$0xff] (!%p5012_p7)  }
 0x4ae   : > { %v3335_v63 = vadd.f32 %v3334_v56, %v3294_v57  ;;  %v3298_v0 = vpop.f32.mrb[11].mxu0  ;;  %v3339_v1 = vpop.f32.mrb[11].mxu1  ;;  %v5944_v56 = vld [vmem:[#allocation12 + $0x14c] ss:$16 sps:$4 sm:$0xff] (!%p5012_p7)   ;;  %v5946_v57 = vld [vmem:[#allocation12 + $0x140] ss:$16 sps:$4 sm:$0xff] (!%p5012_p7)   ;;  %4252 = vmatpush1.bf16.msra.mxu1 (!%p5012_p7), %v5941_v54 }
 0x4af   : > { %v3337_v2 = vadd.f32 %v3336_v59, %v3296_v60  ;;  %3356 = sbr.rel (%p5012_p7) target bundleno = 1707 (0x6ab), region = 84  ;;  %v5947_v58 = vld [vmem:[#allocation12 + $0x148] ss:$16 sps:$4 sm:$0xff] (!%p5012_p7)   ;;  %v5948_v59 = vld [vmem:[#allocation12 + $0x164] ss:$16 sps:$4 sm:$0xff] (!%p5012_p7)   ;;  %4253 = vmatprep.subr.bf16.mxu1 (!%p5012_p7), %v5944_v56 }
 0x4b0   : > { %v3343_v3 = vadd.f32 %v3335_v63, %v6847_v41  ;;  %v5888_v41 = vld [vmem:[#allocation12 + $0x24] ss:$16 sps:$4 sm:$0xff] (!%p5012_p7)   ;;  %v5950_v60 = vld [vmem:[#allocation12 + $0x16c] ss:$16 sps:$4 sm:$0xff] (!%p5012_p7)   ;;  %v5952_v61 = vld [vmem:[#allocation12 + $0x160] ss:$16 sps:$4 sm:$0xff] (!%p5012_p7)  }
 0x4b1   : > { %v3344_v50 = vadd.f32 %v5881_v4, %v3337_v2  ;;  %4153 = vmatprep.subr.bf16.mxu0 (!%p5012_p7), %v5888_v41  ;;  %v5953_v62 = vld [vmem:[#allocation12 + $0x168] ss:$16 sps:$4 sm:$0xff] (!%p5012_p7)   ;;  %v5954_v63 = vld [vmem:[#allocation12 + $0x184] ss:$16 sps:$4 sm:$0xff] (!%p5012_p7)   ;;  %v5956_v0 = vld [vmem:[#allocation12 + $0x18c] ss:$16 sps:$4 sm:$0xff] (!%p5012_p7)  }
 0x4b2   : > { %v7031_v5 = vmax.f32 %v3343_v3, 0.0  ;;  %4154 = vmatpush1.bf16.msra.mxu0 (!%p5012_p7), %v5892_v13  ;;  %4254 = vmatpush1.bf16.msra.mxu1 (!%p5012_p7), %v5947_v58  ;;  %v5958_v1 = vld [vmem:[#allocation12 + $0x180] ss:$16 sps:$4 sm:$0xff] (!%p5012_p7)   ;;  %v5959_v2 = vld [vmem:[#allocation12 + $0x188] ss:$16 sps:$4 sm:$0xff] (!%p5012_p7)  }
 0x4b3   : > { %v7033_v6 = vmax.f32 %v3344_v50, 0.0  ;;  %4155 = vmatprep.subr.bf16.mxu0 (!%p5012_p7), %v5894_v15  ;;  %4255 = vmatprep.subr.bf16.mxu1 (!%p5012_p7), %v5950_v60  ;;  %v5960_v3 = vld [vmem:[#allocation12 + $0x1a4] ss:$16 sps:$4 sm:$0xff] (!%p5012_p7)   ;;  %v5962_v4 = vld [vmem:[#allocation12 + $0x1ac] ss:$16 sps:$4 sm:$0xff] (!%p5012_p7)  }
 0x4b4   : > { %3351 = vst [vmem:[#allocation2 + $0x10] sm:$0xff] %v7031_v5  ;;  %v5964_v50 = vld [vmem:[#allocation12 + $0x1a0] ss:$16 sps:$4 sm:$0xff] (!%p5012_p7)   ;;  %v5972_v41 = vld [vmem:[#allocation12 + $0x1e4] ss:$16 sps:$4 sm:$0xff] (!%p5012_p7)  }
 0x4b5   : > { %3352 = vst [vmem:[#allocation2 + $0x18] sm:$0xff] %v7033_v6  ;;  %v5976_v13 = vld [vmem:[#allocation12 + $0x1e0] ss:$16 sps:$4 sm:$0xff] (!%p5012_p7)   ;;  %v5980_v15 = vld [vmem:[#allocation12 + $0x204] ss:$16 sps:$4 sm:$0xff] (!%p5012_p7)   ;;  %v3360_v26 = vpack.c.bf16 (!%p5012_p7), %v7033_v6, %v7033_v6 }
 0x4b6   : > { %4156 = vmatpush1.bf16.msra.mxu0 %v5898_v19  ;;  %4256 = vmatpush1.bf16.msra.mxu1 %v5953_v62  ;;  %v5978_v19 = vld [vmem:[#allocation12 + $0x200] ss:$16 sps:$4 sm:$0xff]   ;;  %v6001_v6 = vld [vmem:[#allocation12 + $0x26c] ss:$16 sps:$4 sm:$0xff]   ;;  %v6023_v54 = vld [vmem:[#allocation12 + $0x2e8] ss:$16 sps:$4 sm:$0xff]  }
 0x4b7   : > { %4157 = vmatprep.subr.bf16.mxu0 %v5900_v21  ;;  %4257 = vmatprep.subr.bf16.mxu1 %v5956_v0  ;;  %v3357_v21 = vpack.c.bf16 %v7021_v43, %v7021_v43  ;;  %v5990_v43 = vld [vmem:[#allocation12 + $0x240] ss:$16 sps:$4 sm:$0xff]   ;;  %v6031_v56 = vld [vmem:[#allocation12 + $0x30c] ss:$16 sps:$4 sm:$0xff]   ;;  %v6029_v58 = vld [vmem:[#allocation12 + $0x308] ss:$16 sps:$4 sm:$0xff]  }
 0x4b8   : > { %v6037_v60 = vld [vmem:[#allocation12 + $0x32c] ss:$16 sps:$4 sm:$0xff]   ;;  %v6035_v62 = vld [vmem:[#allocation12 + $0x328] ss:$16 sps:$4 sm:$0xff]  }
 0x4b9   : > { %v6043_v0 = vld [vmem:[#allocation12 + $0x34c] ss:$16 sps:$4 sm:$0xff]  }
 0x4ba   : > { %4158 = vmatpush1.bf16.msra.mxu0 %v5904_v25  ;;  %4258 = vmatpush1.bf16.msra.mxu1 %v5959_v2  ;;  %v5989_v25 = vld [vmem:[#allocation12 + $0x22c] ss:$16 sps:$4 sm:$0xff]   ;;  %v6041_v2 = vld [vmem:[#allocation12 + $0x348] ss:$16 sps:$4 sm:$0xff]  }
 0x4bb   : > { %4159 = vmatprep.subr.bf16.mxu0 %v5906_v27  ;;  %4259 = vmatprep.subr.bf16.mxu1 %v5962_v4  ;;  %v5984_v27 = vld [vmem:[#allocation12 + $0x220] ss:$16 sps:$4 sm:$0xff]   ;;  %v6049_v4 = vld [vmem:[#allocation12 + $0x36c] ss:$16 sps:$4 sm:$0xff]  }
 0x4be   : > { %4160 = vmatpush1.bf16.msra.mxu0 %v5910_v17  ;;  %4260 = vmatpush1.bf16.msra.mxu1 %v5965_v7  ;;  %v5992_v17 = vld [vmem:[#allocation12 + $0x244] ss:$16 sps:$4 sm:$0xff]   ;;  %v6047_v7 = vld [vmem:[#allocation12 + $0x368] ss:$16 sps:$4 sm:$0xff]  }
 0x4bf   : > { %4161 = vmatprep.subr.bf16.mxu0 %v5912_v18  ;;  %4261 = vmatprep.subr.bf16.mxu1 %v5968_v9  ;;  %v5993_v18 = vld [vmem:[#allocation12 + $0x248] ss:$16 sps:$4 sm:$0xff]   ;;  %v6055_v9 = vld [vmem:[#allocation12 + $0x38c] ss:$16 sps:$4 sm:$0xff]  }
 0x4c2   : > { %4162 = vmatpush1.bf16.msra.mxu0 %v5916_v31  ;;  %4262 = vmatpush1.bf16.msra.mxu1 %v5971_v11  ;;  %v5996_v31 = vld [vmem:[#allocation12 + $0x260] ss:$16 sps:$4 sm:$0xff]   ;;  %v6053_v11 = vld [vmem:[#allocation12 + $0x388] ss:$16 sps:$4 sm:$0xff]  }
 0x4c3   : > { %4163 = vmatprep.subr.bf16.mxu0 %v5918_v33  ;;  %4263 = vmatprep.subr.bf16.mxu1 %v5974_v12  ;;  %v6004_v33 = vld [vmem:[#allocation12 + $0x284] ss:$16 sps:$4 sm:$0xff]   ;;  %v6061_v12 = vld [vmem:[#allocation12 + $0x3ac] ss:$16 sps:$4 sm:$0xff]  }
 0x4c6   : > { %4164 = vmatpush1.bf16.msra.mxu0 %v5922_v35  ;;  %4264 = vmatpush1.bf16.msra.mxu1 %v5977_v14  ;;  %v6002_v35 = vld [vmem:[#allocation12 + $0x280] ss:$16 sps:$4 sm:$0xff]   ;;  %v6059_v14 = vld [vmem:[#allocation12 + $0x3a8] ss:$16 sps:$4 sm:$0xff]  }
 0x4c7   : > { %4165 = vmatprep.subr.bf16.mxu0 %v5924_v37  ;;  %4274 = vmatprep.subr.bf16.mxu1 %v5983_v16  ;;  %v6010_v37 = vld [vmem:[#allocation12 + $0x2a4] ss:$16 sps:$4 sm:$0xff]   ;;  %v6067_v16 = vld [vmem:[#allocation12 + $0x3cc] ss:$16 sps:$4 sm:$0xff]  }
 0x4c9   : > { %4266 = vmatmul.mubr.bf16.vlgmr.msra.gmra.mrb[0].mxu1 %v3357_v21 }
 0x4ca   : > { %4166 = vmatpush1.bf16.msra.mxu0 %v5928_v39  ;;  %4275 = vmatpush1.bf16.msra.mxu1 %v5981_v20  ;;  %v6008_v39 = vld [vmem:[#allocation12 + $0x2a0] ss:$16 sps:$4 sm:$0xff]   ;;  %v6065_v20 = vld [vmem:[#allocation12 + $0x3c8] ss:$16 sps:$4 sm:$0xff]  }
 0x4cb   : > { %4167 = vmatprep.subr.bf16.mxu0 %v5930_v42  ;;  %4276 = vmatprep.subr.bf16.mxu1 %v5989_v25  ;;  %v6016_v42 = vld [vmem:[#allocation12 + $0x2c4] ss:$16 sps:$4 sm:$0xff]   ;;  %v6068_v25 = vld [vmem:[#allocation12 + $0x3e0] ss:$16 sps:$4 sm:$0xff]  }
 0x4cc   : > { %4306 = vmatprep.mubr.bf16.mxu1 %v3360_v26 }
 0x4ce   : > { %4168 = vmatpush1.bf16.msra.mxu0 %v5934_v45  ;;  %4277 = vmatpush1.bf16.msra.mxu1 %v5987_v28  ;;  %v6014_v45 = vld [vmem:[#allocation12 + $0x2c0] ss:$16 sps:$4 sm:$0xff]  }
 0x4cf   : > { %4169 = vmatprep.subr.bf16.mxu0 %v5936_v49  ;;  %4278 = vmatprep.subr.bf16.mxu1 %v5995_v29  ;;  %v6022_v49 = vld [vmem:[#allocation12 + $0x2e4] ss:$16 sps:$4 sm:$0xff]   ;;  %v3489_v28 = vld [vmem:[#allocation14] sm:$0xf] }
 0x4d0   : > { %v3502_v29 = vrot.slane %v3489_v28, %v1530_v51 }
 0x4d2   : > { %4170 = vmatpush1.bf16.msra.mxu0 %v5940_v53  ;;  %4279 = vmatpush1.bf16.msra.mxu1 %v5993_v18  ;;  %v6020_v53 = vld [vmem:[#allocation12 + $0x2e0] ss:$16 sps:$4 sm:$0xff]  }
 0x4d3   : > { %4171 = vmatprep.subr.bf16.mxu0 %v5942_v55  ;;  %4280 = vmatprep.subr.bf16.mxu1 %v6001_v6  ;;  %v6028_v55 = vld [vmem:[#allocation12 + $0x304] ss:$16 sps:$4 sm:$0xff]   ;;  %v3506_v6 = vrot.slane %v3489_v28, %v2507_v23 }
 0x4d6   : > { %4172 = vmatpush1.bf16.msra.mxu0 %v5946_v57  ;;  %4281 = vmatpush1.bf16.msra.mxu1 %v5999_v32  ;;  %v6026_v57 = vld [vmem:[#allocation12 + $0x300] ss:$16 sps:$4 sm:$0xff]  }
 0x4d7   : > { %4173 = vmatprep.subr.bf16.mxu0 %v5948_v59  ;;  %4282 = vmatprep.subr.bf16.mxu1 %v6007_v34  ;;  %v6034_v59 = vld [vmem:[#allocation12 + $0x324] ss:$16 sps:$4 sm:$0xff]  }
 0x4da   : > { %4174 = vmatpush1.bf16.msra.mxu0 %v5952_v61  ;;  %4283 = vmatpush1.bf16.msra.mxu1 %v6005_v36  ;;  %v6032_v61 = vld [vmem:[#allocation12 + $0x320] ss:$16 sps:$4 sm:$0xff]  }
 0x4db   : > { %4175 = vmatprep.subr.bf16.mxu0 %v5954_v63  ;;  %4284 = vmatprep.subr.bf16.mxu1 %v6013_v38  ;;  %v6040_v63 = vld [vmem:[#allocation12 + $0x344] ss:$16 sps:$4 sm:$0xff]  }
 0x4de   : > { %4176 = vmatpush1.bf16.msra.mxu0 %v5958_v1  ;;  %4285 = vmatpush1.bf16.msra.mxu1 %v6011_v40  ;;  %v6038_v1 = vld [vmem:[#allocation12 + $0x340] ss:$16 sps:$4 sm:$0xff]  }
 0x4df   : > { %4177 = vmatprep.subr.bf16.mxu0 %v5960_v3  ;;  %4286 = vmatprep.subr.bf16.mxu1 %v6019_v44  ;;  %v6046_v3 = vld [vmem:[#allocation12 + $0x364] ss:$16 sps:$4 sm:$0xff]  }
 0x4e2   : > { %4178 = vmatpush1.bf16.msra.mxu0 %v5964_v50  ;;  %4287 = vmatpush1.bf16.msra.mxu1 %v6017_v46  ;;  %v6044_v50 = vld [vmem:[#allocation12 + $0x360] ss:$16 sps:$4 sm:$0xff]  }
 0x4e3   : > { %4179 = vmatprep.subr.bf16.mxu0 %v5966_v8  ;;  %4288 = vmatprep.subr.bf16.mxu1 %v6025_v52  ;;  %v6052_v8 = vld [vmem:[#allocation12 + $0x384] ss:$16 sps:$4 sm:$0xff]  }
 0x4e6   : > { %4180 = vmatpush1.bf16.msra.mxu0 %v5970_v10  ;;  %4289 = vmatpush1.bf16.msra.mxu1 %v6023_v54  ;;  %v6050_v10 = vld [vmem:[#allocation12 + $0x380] ss:$16 sps:$4 sm:$0xff]  }
 0x4e7   : > { %4181 = vmatprep.subr.bf16.mxu0 %v5972_v41  ;;  %4290 = vmatprep.subr.bf16.mxu1 %v6031_v56  ;;  %v6058_v41 = vld [vmem:[#allocation12 + $0x3a4] ss:$16 sps:$4 sm:$0xff]  }
 0x4ea   : > { %4182 = vmatpush1.bf16.msra.mxu0 %v5976_v13  ;;  %4291 = vmatpush1.bf16.msra.mxu1 %v6029_v58  ;;  %v6056_v13 = vld [vmem:[#allocation12 + $0x3a0] ss:$16 sps:$4 sm:$0xff]  }
 0x4eb   : > { %4192 = vmatprep.subr.bf16.mxu0 %v5980_v15  ;;  %4292 = vmatprep.subr.bf16.mxu1 %v6037_v60  ;;  %v6064_v15 = vld [vmem:[#allocation12 + $0x3c4] ss:$16 sps:$4 sm:$0xff]  }
 0x4ed   : > { %4184 = vmatmul.mubr.bf16.vlgmr.msra.gmra.mrb[0].mxu0 %v3357_v21  ;;  %v6070_v21 = vld [vmem:[#allocation12 + $0x3e4] ss:$16 sps:$4 sm:$0xff]  }
 0x4ee   : > { %4193 = vmatpush1.bf16.msra.mxu0 %v5978_v19  ;;  %4224 = vmatprep.mubr.bf16.mxu0 %v3360_v26  ;;  %v6062_v19 = vld [vmem:[#allocation12 + $0x3c0] ss:$16 sps:$4 sm:$0xff]   ;;  %v6071_v26 = vld [vmem:[#allocation12 + $0x3e8] ss:$16 sps:$4 sm:$0xff]  }
 0x4ef   : > { %4194 = vmatprep.subr.bf16.mxu0 %v5986_v24  ;;  %4293 = vmatpush1.bf16.msra.mxu1 %v6035_v62  ;;  %v6073_v24 = vld [vmem:[#allocation12 + $0x3ec] ss:$16 sps:$4 sm:$0xff]  }
 0x4f0   : > { %4294 = vmatprep.subr.bf16.mxu1 %v6043_v0 }
 0x4f2   : > { %4195 = vmatpush1.bf16.msra.mxu0 %v5984_v27  ;;  %v3359_v27 = vpack.c.bf16 %v7031_v5, %v7031_v5 }
 0x4f3   : > { %4196 = vmatprep.subr.bf16.mxu0 %v5992_v17  ;;  %4295 = vmatpush1.bf16.msra.mxu1 %v6041_v2  ;;  %v3494_v17 = vrot.slane %v3489_v28, %v6920_v48 }
 0x4f4   : > { %4296 = vmatprep.subr.bf16.mxu1 %v6049_v4 }
 0x4f6   : > { %4197 = vmatpush1.bf16.msra.mxu0 %v5990_v43  ;;  %v3498_v43 = vrot.slane %v3489_v28, %v7011_v22 }
 0x4f7   : > { %4198 = vmatprep.subr.bf16.mxu0 %v5998_v30  ;;  %4297 = vmatpush1.bf16.msra.mxu1 %v6047_v7 }
 0x4f8   : > { %4298 = vmatprep.subr.bf16.mxu1 %v6055_v9 }
 0x4fa   : > { %4199 = vmatpush1.bf16.msra.mxu0 %v5996_v31 }
 0x4fb   : > { %4200 = vmatprep.subr.bf16.mxu0 %v6004_v33  ;;  %4299 = vmatpush1.bf16.msra.mxu1 %v6053_v11 }
 0x4fc   : > { %4300 = vmatprep.subr.bf16.mxu1 %v6061_v12 }
 0x4fe   : > { %4201 = vmatpush1.bf16.msra.mxu0 %v6002_v35 }
 0x4ff   : > { %4202 = vmatprep.subr.bf16.mxu0 %v6010_v37  ;;  %4301 = vmatpush1.bf16.msra.mxu1 %v6059_v14 }
 0x500   : > { %4302 = vmatprep.subr.bf16.mxu1 %v6067_v16 }
 0x502   : > { %4203 = vmatpush1.bf16.msra.mxu0 %v6008_v39 }
 0x503   : > { %4204 = vmatprep.subr.bf16.mxu0 %v6016_v42  ;;  %4303 = vmatpush1.bf16.msra.mxu1 %v6065_v20 }
 0x504   : > { %4304 = vmatprep.subr.bf16.mxu1 %v6073_v24 }
 0x506   : > { %4205 = vmatpush1.bf16.msra.mxu0 %v6014_v45 }
 0x507   : > { %4206 = vmatprep.subr.bf16.mxu0 %v6022_v49  ;;  %4305 = vmatpush1.bf16.msra.mxu1 %v6071_v26 }
 0x50a   : > { %4207 = vmatpush1.bf16.msra.mxu0 %v6020_v53  ;;  %4307 = vmatmul.mubr.bf16.vlgmr.msra.gmra.mrb[0].mxu1 %v3359_v27 }
 0x50b   : > { %4208 = vmatprep.subr.bf16.mxu0 %v6028_v55 }
 0x50e   : > { %4209 = vmatpush1.bf16.msra.mxu0 %v6026_v57 }
 0x50f   : > { %4210 = vmatprep.subr.bf16.mxu0 %v6034_v59 }
 0x512   : > { %4211 = vmatpush1.bf16.msra.mxu0 %v6032_v61 }
 0x513   : > { %4212 = vmatprep.subr.bf16.mxu0 %v6040_v63 }
 0x516   : > { %4213 = vmatpush1.bf16.msra.mxu0 %v6038_v1 }
 0x517   : > { %4214 = vmatprep.subr.bf16.mxu0 %v6046_v3 }
 0x51a   : > { %4215 = vmatpush1.bf16.msra.mxu0 %v6044_v50 }
 0x51b   : > { %4216 = vmatprep.subr.bf16.mxu0 %v6052_v8 }
 0x51e   : > { %4217 = vmatpush1.bf16.msra.mxu0 %v6050_v10 }
 0x51f   : > { %4218 = vmatprep.subr.bf16.mxu0 %v6058_v41 }
 0x522   : > { %4219 = vmatpush1.bf16.msra.mxu0 %v6056_v13 }
 0x523   : > { %4220 = vmatprep.subr.bf16.mxu0 %v6064_v15 }
 0x526   : > { %4221 = vmatpush1.bf16.msra.mxu0 %v6062_v19 }
 0x527   : > { %4222 = vmatprep.subr.bf16.mxu0 %v6070_v21 }
 0x52a   : > { %4223 = vmatpush1.bf16.msra.mxu0 %v6068_v25 }
 0x52d   : > { %4225 = vmatmul.mubr.bf16.vlgmr.msra.gmra.mrb[0].mxu0 %v3359_v27 }
 0x5dd   : > { %v4308_v30 = vpop.f32.mrb[0].mxu1 }
 0x5de   : > { %v4310_v5 = vpop.f32.mrb[1].mxu1  ;;  %v5173_v33 = vadd.f32 %v4308_v30, %v3502_v29 }
 0x5df   : > { %v4312_v36 = vpop.f32.mrb[2].mxu1  ;;  %v5174_v40 = vadd.f32 %v4310_v5, %v3506_v6 }
 0x5e0   : > { %v4313_v48 = vpop.f32.mrb[3].mxu1  ;;  %v4317_v51 = vmul.f32 %v5173_v33, %v5173_v33 }
 0x5e1   : > { %v4318_v22 = vmul.f32 %v5174_v40, %v5174_v40 }
 0x600   : > { %v4226_v18 = vpop.f32.mrb[0].mxu0 }
 0x601   : > { %v5171_v31 = vadd.f32 %v4226_v18, %v3494_v17  ;;  %v4228_v32 = vpop.f32.mrb[1].mxu0 }
 0x602   : > { %v5172_v34 = vadd.f32 %v4228_v32, %v3498_v43  ;;  %v4230_v35 = vpop.f32.mrb[2].mxu0 }
 0x603   : > { %v4315_v37 = vmul.f32 %v5171_v31, %v5171_v31  ;;  %v4231_v38 = vpop.f32.mrb[3].mxu0 }
 0x604   : > { %v4316_v39 = vmul.f32 %v5172_v34, %v5172_v34 }
 0x606   : > { %v4319_v42 = vadd.f32 %v4316_v39, %v4315_v37 }
 0x608   : > { %v4320_v44 = vadd.f32 %v4319_v42, %v4317_v51 }
 0x60a   : > { %v4321_v45 = vadd.f32 %v4320_v44, %v4318_v22 }
 0x60c   : > { %4322 = vadd.xlane.f32.xlu0 %v4321_v45 }
 0x699   : > { %v4323_v47 = vpop.xlane.xlu0 %4322 }
 0x69a   : > { %v4324_v23 = vmax.f32 %v4323_v47, 1e-24 }
 0x69c   : > { %6074 = vrsqrt.f32 %v4324_v23 }
 0x6a6   : > { %v6075_v46 = vpop.eup %6074 }
 0x6a7   : > { %v4326_v49 = vmul.f32 %v6075_v46, %v5171_v31  ;;  %v4327_v52 = vmul.f32 %v6075_v46, %v5172_v34  ;;  %v4328_v53 = vmul.f32 %v6075_v46, %v5173_v33  ;;  %v4329_v54 = vmul.f32 %v6075_v46, %v5174_v40 }
 0x6a9   : > { %4330 = vst [vmem:[#allocation15] sm:$0xff] %v4326_v49  ;;  %4331 = vst [vmem:[#allocation15 + $0x8] sm:$0xff] %v4327_v52 }
 0x6aa   : > { %4332 = vst [vmem:[#allocation15 + $0x10] sm:$0xff] %v4328_v53  ;;  %4333 = vst [vmem:[#allocation15 + $0x18] sm:$0xff] %v4329_v54 }
 0x6ab PF: > { %p5245_p5 = scmp.eq.s32.totalorder %s6451_s9, 4  ;;  %s6379_s27 = smov [#allocation15]  }
 0x6ac   : > { %s4344_s18 = sshll.u32 %s6379_s27, 4  ;;  %s4345_s18 = int_to_ptr.vmem [resolvable:$true] %s4344_s18 }
 0x6ad   : > { %s6276_s19 = scalar_lea.vmem %s4345_s18, 512  ;;  %p6283_p11 = scmp.lt.s32.totalorder %s4345_s18, %s4345_s18 }
 0x6ae   : > { %p6277_p4 = scmp.ne.s32.totalorder %s4345_s18, %s6276_s19  ;;  %p6284_p8 = scmp.lt.s32.totalorder %s6276_s19, %s6276_s19 }
 0x6b0   : > { %p6278_p1 = pnand %p6277_p4, %p5245_p5  ;;  %p6285_p10 = por %p6284_p8, %p6283_p11 }
 0x6b2   : > { %p6279_p13 = pneg %p6278_p1 }
 0x6b4   : > { %p6286_p12 = pnand %p6285_p10, %p6279_p13 }
 0x6b6   : > { %6289 = shalt.err (!%p6286_p12)
}
 0x6b7   : > { %s6290_s13 = scalar_lea.hbm %s7098_s7, 512 }
 0x6b8   : > { %p6291_p0 = scmp.ne.s32.totalorder %s7098_s7, %s6290_s13  ;;  %p6296_p6 = scmp.lt.u32.totalorder %s6290_s13, %s7098_s7 }
 0x6ba   : > { %p6292_p9 = pnand %p6291_p0, %p5245_p5 }
 0x6bc   : > { %p6293_p2 = pneg %p6292_p9 }
 0x6be   : > { %p6298_p3 = pnand %p6296_p6, %p6293_p2 }
 0x6c0   : > { %6301 = shalt.err (!%p6298_p3)
}
 0x6c1   : > { %5208 = dma.vmem_to_hbm [thread:$0]  (%p5245_p5), %s4345_s18, 512, %s7098_s7, [#allocation5]  }
 0x6c2   : > { %6343 = dma.done.wait (%p5245_p5), [#allocation5], 512  }
 0x6c3   : > { %6345 = vsyncadd (%p5245_p5), [#allocation5], 4294966784 }
 0x6c4 PF: > { %s24_s29 = sadd.s32 1, %s6368_s29   ;;  %s7140_s3 = sld [smem:[#allocation22_spill]] }
 0x6c5   : > { %p21_p7 = scmp.ge.s32.totalorder %s24_s29, 7   ;;  %s7141_s1 = sld [smem:[#allocation21_spill]] }
 0x6c6   : > { %s7142_s24 = smov %s6352_s25  ;;  %s7143_s25 = smov %s6356_s26 }
 0x6c7   : > { %s7145_s27 = smov %s6364_s28  ;;  %23 = sbr.rel (!%p21_p7) target bundleno = 12 (0xc), region = 128 }
 0x6ca   : > { %s7144_s26 = smov %s7140_s3 }
 0x6cb   : > { %s7146_s28 = smov %s7141_s1 }
 0x6ce   :  { %4357 = vsyncpa [#allocation4], 1 }
 0x6cf   :  { %4359 = vsyncpa [#allocation4 + $0x1], 1 }
 0x6d0   :  { %4360 = vsyncpa [#allocation7], 1 }
 0x6d1   :  { %4361 = vsyncpa [#allocation10], 1 }
 0x6d2   :  { %4363 = vsyncpa [#allocation10 + $0x1], 1 }
 0x6d3   :  { %4364 = vsyncpa [#allocation13], 1 }
 0x6d4   :  { %4365 = vsyncpa [#allocation5], 1 }
 0x6d5   :  { %4367 = vsyncpa [#allocation5 + $0x1], 1 }

</bundles_post_ra>
